<compile_context>
chip_gen: v7x
topology: tpu7x:2x2x1
jax: 0.10.0
libtpu: 0.0.40
codegen_flags: <defaults>
</compile_context>

<pallas_src>
import functools

import jax
import jax.numpy as jnp
import numpy as np
from jax import lax
from jax.experimental import pallas as pl
from jax.experimental.pallas import tpu as pltpu


# ----------------------------------------------------------------------------
# Kernel: one (batch, row-tile) step of the stride-2 3x3 conv.
#   out_tile(TM, C) = bias + sum over 9 taps of phase_slab(TM, C) @ W_tap(C, C)
# ----------------------------------------------------------------------------
def _downsample_kernel(pee_ref, peo_ref, poe_ref, poo_ref, w_ref, b_ref, o_ref,
                       *, wp, tm):
    # Phase blocks: (1, 1, TMH, C) -> (TMH, C).  Loaded once, reused per tap.
    phases = (pee_ref[0, 0], peo_ref[0, 0], poe_ref[0, 0], poo_ref[0, 0])
    acc = None
    for ky in range(3):
        for kx in range(3):
            # padded-input row 2*ho+ky == row (ho + ky//2) of the parity-(ky%2)
            # phase; same for columns.  Flattened, that is a static offset.
            p = phases[(ky % 2) * 2 + (kx % 2)]
            off = (ky // 2) * wp + (kx // 2)
            a = p[off:off + tm, :]                                   # (TM, C)
            c = jnp.dot(a, w_ref[ky * 3 + kx],                       # (C, C)
                        preferred_element_type=jnp.float32)
            acc = c if acc is None else acc + c
    o_ref[0, 0] = acc + b_ref[...]


# ----------------------------------------------------------------------------
# Wrapper
# ----------------------------------------------------------------------------
def downsample_forward(x_nchw, weight, bias, *, row_tile_target=256):
    """x_nchw: (N, C, H, W) f32; weight: (C, C, 3, 3) [PyTorch OIHW]; bias: (C,)."""
    N, C, H, W = x_nchw.shape
    h_out = (H - 1) // 2 + 1
    w_out = (W - 1) // 2 + 1
    hp, wp = h_out + 1, w_out + 1

    # NHWC, zero-padded so all four parity phases have shape (hp, wp).
    x = jnp.transpose(x_nchw, (0, 2, 3, 1)).astype(jnp.float32)
    xpad = jnp.pad(x, ((0, 0), (1, 2 * hp - H - 1), (1, 2 * wp - W - 1), (0, 0)))

    # Row tiling: TM = th*wp output pixels per grid step (target ~row_tile_target
    # MXU rows), with a (wp+1)-row flat halo baked into each phase tile.
    th = max(1, min(h_out, max(1, row_tile_target // wp)))
    n_tiles = -(-h_out // th)
    tm = th * wp
    tmh = ((tm + wp + 1 + 7) // 8) * 8            # tile + halo, sublane-rounded
    total = (n_tiles - 1) * tm + tmh              # flat rows needed per phase

    idx = jnp.arange(n_tiles)[:, None] * tm + jnp.arange(tmh)[None, :]
    phase_tiles = []
    for pr in (0, 1):            # row parity
        for pc in (0, 1):        # col parity
            ph = xpad[:, pr::2, pc::2, :]                       # (N, hp, wp, C)
            flat = ph.reshape(N, hp * wp, C)
            flat = jnp.pad(flat, ((0, 0), (0, total - hp * wp), (0, 0)))
            phase_tiles.append(jnp.take(flat, idx, axis=1))     # (N, nt, tmh, C)

    # Per-tap weight matrices: w_taps[ky*3+kx][ci, co] = weight[co, ci, ky, kx].
    w_taps = jnp.transpose(weight, (2, 3, 1, 0)).reshape(9, C, C).astype(jnp.float32)
    b2d = bias.reshape(1, C).astype(jnp.float32)

    phase_spec = pl.BlockSpec((1, 1, tmh, C), lambda n, t: (n, t, 0, 0))
    out_tiles = pl.pallas_call(
        functools.partial(_downsample_kernel, wp=wp, tm=tm),
        out_shape=jax.ShapeDtypeStruct((N, n_tiles, tm, C), jnp.float32),
        grid=(N, n_tiles),
        in_specs=[phase_spec, phase_spec, phase_spec, phase_spec,
                  pl.BlockSpec((9, C, C), lambda n, t: (0, 0, 0)),
                  pl.BlockSpec((1, C), lambda n, t: (0, 0))],
        out_specs=pl.BlockSpec((1, 1, tm, C), lambda n, t: (n, t, 0, 0)),
        compiler_params=pltpu.CompilerParams(
            dimension_semantics=("parallel", "parallel"),
            vmem_limit_bytes=64 * 1024 * 1024),
    )(*phase_tiles, w_taps, b2d)

    # Drop the throw-away column / extra rows and go back to NCHW.
    out = out_tiles.reshape(N, n_tiles * th, wp, C)[:, :h_out, :w_out, :]
    return jnp.transpose(out, (0, 3, 1, 2))


# ----------------------------------------------------------------------------
# Pure-JAX reference (mirrors the PyTorch module) for validation
# ----------------------------------------------------------------------------
def ref_downsample(x_nchw, weight, bias):
    y = lax.conv_general_dilated(
        x_nchw, weight, window_strides=(2, 2), padding=((1, 1), (1, 1)),
        dimension_numbers=("NCHW", "OIHW", "NCHW"),
        precision=lax.Precision.HIGHEST)
    return y + bias[None, :, None, None]


# ----------------------------------------------------------------------------
if __name__ == "__main__":
    N, C, H, W = 2, 128, 16, 16        # channels lane-dense (multiple of 128)

    key = jax.random.PRNGKey(0)
    k0, k1, k2 = jax.random.split(key, 3)
    x = jax.random.normal(k0, (N, C, H, W), jnp.float32)
    weight = jax.random.normal(k1, (C, C, 3, 3), jnp.float32) / jnp.sqrt(9.0 * C)
    bias = 0.1 * jax.random.normal(k2, (C,), jnp.float32)

    out = jax.block_until_ready(downsample_forward(x, weight, bias))
    ref = ref_downsample(x, weight, bias)

    assert out.shape == (N, C, H // 2, W // 2), out.shape
    np.testing.assert_allclose(np.asarray(out), np.asarray(ref),
                               rtol=1e-4, atol=1e-4)
    print("KERNEL_OK")
</pallas_src>

<mosaic_0001>
module attributes {stable_mosaic.version = 11 : i64} {
  func.func @_downsample_kernel(%arg0: i32, %arg1: i32, %arg2: memref<1x1x88x128xf32, #tpu.memory_space<vmem>>, %arg3: memref<1x1x88x128xf32, #tpu.memory_space<vmem>>, %arg4: memref<1x1x88x128xf32, #tpu.memory_space<vmem>>, %arg5: memref<1x1x88x128xf32, #tpu.memory_space<vmem>>, %arg6: memref<9x128x128xf32, #tpu.memory_space<vmem>>, %arg7: memref<1x128xf32, #tpu.memory_space<vmem>>, %arg8: memref<1x1x72x128xf32, #tpu.memory_space<vmem>>) attributes {dimension_semantics = [#tpu.dimension_semantics<parallel>, #tpu.dimension_semantics<parallel>], iteration_bounds = array<i64: 2, 1>, scalar_prefetch = 0 : i64, scratch_operands = 0 : i64, tpu.core_type = #tpu.core_type<tc>, window_params = [{transform_indices = @transform_0, window_bounds = array<i64: 1, 1, 88, 128>}, {transform_indices = @transform_1, window_bounds = array<i64: 1, 1, 88, 128>}, {transform_indices = @transform_2, window_bounds = array<i64: 1, 1, 88, 128>}, {transform_indices = @transform_3, window_bounds = array<i64: 1, 1, 88, 128>}, {pipeline_mode = #tpu.pipeline_mode<synchronous>, transform_indices = @transform_4, window_bounds = array<i64: 9, 128, 128>}, {pipeline_mode = #tpu.pipeline_mode<synchronous>, transform_indices = @transform_5, window_bounds = array<i64: 1, 128>}, {transform_indices = @transform_6, window_bounds = array<i64: 1, 1, 72, 128>}]} {
    %c0 = arith.constant 0 : index
    %c0_0 = arith.constant 0 : index
    %c0_1 = arith.constant 0 : index
    %c0_2 = arith.constant 0 : index
    %0 = vector.load %arg2[%c0, %c0_0, %c0_1, %c0_2] : memref<1x1x88x128xf32, #tpu.memory_space<vmem>>, vector<1x1x88x128xf32>
    %1 = vector.shape_cast %0 : vector<1x1x88x128xf32> to vector<88x128xf32>
    %c0_3 = arith.constant 0 : index
    %c0_4 = arith.constant 0 : index
    %c0_5 = arith.constant 0 : index
    %c0_6 = arith.constant 0 : index
    %2 = vector.load %arg3[%c0_3, %c0_4, %c0_5, %c0_6] : memref<1x1x88x128xf32, #tpu.memory_space<vmem>>, vector<1x1x88x128xf32>
    %3 = vector.shape_cast %2 : vector<1x1x88x128xf32> to vector<88x128xf32>
    %c0_7 = arith.constant 0 : index
    %c0_8 = arith.constant 0 : index
    %c0_9 = arith.constant 0 : index
    %c0_10 = arith.constant 0 : index
    %4 = vector.load %arg4[%c0_7, %c0_8, %c0_9, %c0_10] : memref<1x1x88x128xf32, #tpu.memory_space<vmem>>, vector<1x1x88x128xf32>
    %5 = vector.shape_cast %4 : vector<1x1x88x128xf32> to vector<88x128xf32>
    %c0_11 = arith.constant 0 : index
    %c0_12 = arith.constant 0 : index
    %c0_13 = arith.constant 0 : index
    %c0_14 = arith.constant 0 : index
    %6 = vector.load %arg5[%c0_11, %c0_12, %c0_13, %c0_14] : memref<1x1x88x128xf32, #tpu.memory_space<vmem>>, vector<1x1x88x128xf32>
    %7 = vector.shape_cast %6 : vector<1x1x88x128xf32> to vector<88x128xf32>
    %8 = vector.extract_strided_slice %1 {offsets = [0, 0], sizes = [72, 128], strides = [1, 1]} : vector<88x128xf32> to vector<72x128xf32>
    %c0_15 = arith.constant 0 : index
    %c0_16 = arith.constant 0 : index
    %c0_17 = arith.constant 0 : index
    %9 = vector.load %arg6[%c0_15, %c0_16, %c0_17] : memref<9x128x128xf32, #tpu.memory_space<vmem>>, vector<1x128x128xf32>
    %10 = vector.shape_cast %9 : vector<1x128x128xf32> to vector<128x128xf32>
    %cst = arith.constant dense<0.000000e+00> : vector<72x128xf32>
    %11 = tpu.matmul %8, %10, %cst {dimension_numbers = #tpu.dot_dimension_numbers<[1], [0], [0], [1], [0, 0, 1, 1], [], []>} : vector<72x128xf32>, vector<128x128xf32>, vector<72x128xf32> -> vector<72x128xf32>
    %12 = vector.extract_strided_slice %3 {offsets = [0, 0], sizes = [72, 128], strides = [1, 1]} : vector<88x128xf32> to vector<72x128xf32>
    %c1 = arith.constant 1 : index
    %c0_18 = arith.constant 0 : index
    %c0_19 = arith.constant 0 : index
    %13 = vector.load %arg6[%c1, %c0_18, %c0_19] : memref<9x128x128xf32, #tpu.memory_space<vmem>>, vector<1x128x128xf32>
    %14 = vector.shape_cast %13 : vector<1x128x128xf32> to vector<128x128xf32>
    %cst_20 = arith.constant dense<0.000000e+00> : vector<72x128xf32>
    %15 = tpu.matmul %12, %14, %cst_20 {dimension_numbers = #tpu.dot_dimension_numbers<[1], [0], [0], [1], [0, 0, 1, 1], [], []>} : vector<72x128xf32>, vector<128x128xf32>, vector<72x128xf32> -> vector<72x128xf32>
    %16 = arith.addf %11, %15 : vector<72x128xf32>
    %17 = vector.extract_strided_slice %1 {offsets = [1, 0], sizes = [72, 128], strides = [1, 1]} : vector<88x128xf32> to vector<72x128xf32>
    %c2 = arith.constant 2 : index
    %c0_21 = arith.constant 0 : index
    %c0_22 = arith.constant 0 : index
    %18 = vector.load %arg6[%c2, %c0_21, %c0_22] : memref<9x128x128xf32, #tpu.memory_space<vmem>>, vector<1x128x128xf32>
    %19 = vector.shape_cast %18 : vector<1x128x128xf32> to vector<128x128xf32>
    %cst_23 = arith.constant dense<0.000000e+00> : vector<72x128xf32>
    %20 = tpu.matmul %17, %19, %cst_23 {dimension_numbers = #tpu.dot_dimension_numbers<[1], [0], [0], [1], [0, 0, 1, 1], [], []>} : vector<72x128xf32>, vector<128x128xf32>, vector<72x128xf32> -> vector<72x128xf32>
    %21 = arith.addf %16, %20 : vector<72x128xf32>
    %22 = vector.extract_strided_slice %5 {offsets = [0, 0], sizes = [72, 128], strides = [1, 1]} : vector<88x128xf32> to vector<72x128xf32>
    %c3 = arith.constant 3 : index
    %c0_24 = arith.constant 0 : index
    %c0_25 = arith.constant 0 : index
    %23 = vector.load %arg6[%c3, %c0_24, %c0_25] : memref<9x128x128xf32, #tpu.memory_space<vmem>>, vector<1x128x128xf32>
    %24 = vector.shape_cast %23 : vector<1x128x128xf32> to vector<128x128xf32>
    %cst_26 = arith.constant dense<0.000000e+00> : vector<72x128xf32>
    %25 = tpu.matmul %22, %24, %cst_26 {dimension_numbers = #tpu.dot_dimension_numbers<[1], [0], [0], [1], [0, 0, 1, 1], [], []>} : vector<72x128xf32>, vector<128x128xf32>, vector<72x128xf32> -> vector<72x128xf32>
    %26 = arith.addf %21, %25 : vector<72x128xf32>
    %27 = vector.extract_strided_slice %7 {offsets = [0, 0], sizes = [72, 128], strides = [1, 1]} : vector<88x128xf32> to vector<72x128xf32>
    %c4 = arith.constant 4 : index
    %c0_27 = arith.constant 0 : index
    %c0_28 = arith.constant 0 : index
    %28 = vector.load %arg6[%c4, %c0_27, %c0_28] : memref<9x128x128xf32, #tpu.memory_space<vmem>>, vector<1x128x128xf32>
    %29 = vector.shape_cast %28 : vector<1x128x128xf32> to vector<128x128xf32>
    %cst_29 = arith.constant dense<0.000000e+00> : vector<72x128xf32>
    %30 = tpu.matmul %27, %29, %cst_29 {dimension_numbers = #tpu.dot_dimension_numbers<[1], [0], [0], [1], [0, 0, 1, 1], [], []>} : vector<72x128xf32>, vector<128x128xf32>, vector<72x128xf32> -> vector<72x128xf32>
    %31 = arith.addf %26, %30 : vector<72x128xf32>
    %32 = vector.extract_strided_slice %5 {offsets = [1, 0], sizes = [72, 128], strides = [1, 1]} : vector<88x128xf32> to vector<72x128xf32>
    %c5 = arith.constant 5 : index
    %c0_30 = arith.constant 0 : index
    %c0_31 = arith.constant 0 : index
    %33 = vector.load %arg6[%c5, %c0_30, %c0_31] : memref<9x128x128xf32, #tpu.memory_space<vmem>>, vector<1x128x128xf32>
    %34 = vector.shape_cast %33 : vector<1x128x128xf32> to vector<128x128xf32>
    %cst_32 = arith.constant dense<0.000000e+00> : vector<72x128xf32>
    %35 = tpu.matmul %32, %34, %cst_32 {dimension_numbers = #tpu.dot_dimension_numbers<[1], [0], [0], [1], [0, 0, 1, 1], [], []>} : vector<72x128xf32>, vector<128x128xf32>, vector<72x128xf32> -> vector<72x128xf32>
    %36 = arith.addf %31, %35 : vector<72x128xf32>
    %37 = vector.extract_strided_slice %1 {offsets = [9, 0], sizes = [72, 128], strides = [1, 1]} : vector<88x128xf32> to vector<72x128xf32>
    %c6 = arith.constant 6 : index
    %c0_33 = arith.constant 0 : index
    %c0_34 = arith.constant 0 : index
    %38 = vector.load %arg6[%c6, %c0_33, %c0_34] : memref<9x128x128xf32, #tpu.memory_space<vmem>>, vector<1x128x128xf32>
    %39 = vector.shape_cast %38 : vector<1x128x128xf32> to vector<128x128xf32>
    %cst_35 = arith.constant dense<0.000000e+00> : vector<72x128xf32>
    %40 = tpu.matmul %37, %39, %cst_35 {dimension_numbers = #tpu.dot_dimension_numbers<[1], [0], [0], [1], [0, 0, 1, 1], [], []>} : vector<72x128xf32>, vector<128x128xf32>, vector<72x128xf32> -> vector<72x128xf32>
    %41 = arith.addf %36, %40 : vector<72x128xf32>
    %42 = vector.extract_strided_slice %3 {offsets = [9, 0], sizes = [72, 128], strides = [1, 1]} : vector<88x128xf32> to vector<72x128xf32>
    %c7 = arith.constant 7 : index
    %c0_36 = arith.constant 0 : index
    %c0_37 = arith.constant 0 : index
    %43 = vector.load %arg6[%c7, %c0_36, %c0_37] : memref<9x128x128xf32, #tpu.memory_space<vmem>>, vector<1x128x128xf32>
    %44 = vector.shape_cast %43 : vector<1x128x128xf32> to vector<128x128xf32>
    %cst_38 = arith.constant dense<0.000000e+00> : vector<72x128xf32>
    %45 = tpu.matmul %42, %44, %cst_38 {dimension_numbers = #tpu.dot_dimension_numbers<[1], [0], [0], [1], [0, 0, 1, 1], [], []>} : vector<72x128xf32>, vector<128x128xf32>, vector<72x128xf32> -> vector<72x128xf32>
    %46 = arith.addf %41, %45 : vector<72x128xf32>
    %47 = vector.extract_strided_slice %1 {offsets = [10, 0], sizes = [72, 128], strides = [1, 1]} : vector<88x128xf32> to vector<72x128xf32>
    %c8 = arith.constant 8 : index
    %c0_39 = arith.constant 0 : index
    %c0_40 = arith.constant 0 : index
    %48 = vector.load %arg6[%c8, %c0_39, %c0_40] : memref<9x128x128xf32, #tpu.memory_space<vmem>>, vector<1x128x128xf32>
    %49 = vector.shape_cast %48 : vector<1x128x128xf32> to vector<128x128xf32>
    %cst_41 = arith.constant dense<0.000000e+00> : vector<72x128xf32>
    %50 = tpu.matmul %47, %49, %cst_41 {dimension_numbers = #tpu.dot_dimension_numbers<[1], [0], [0], [1], [0, 0, 1, 1], [], []>} : vector<72x128xf32>, vector<128x128xf32>, vector<72x128xf32> -> vector<72x128xf32>
    %51 = arith.addf %46, %50 : vector<72x128xf32>
    %c0_42 = arith.constant 0 : index
    %c0_43 = arith.constant 0 : index
    %52 = vector.load %arg7[%c0_42, %c0_43] : memref<1x128xf32, #tpu.memory_space<vmem>>, vector<1x128xf32>
    %53 = vector.broadcast %52 : vector<1x128xf32> to vector<72x128xf32>
    %54 = arith.addf %51, %53 : vector<72x128xf32>
    %c0_44 = arith.constant 0 : index
    %c0_45 = arith.constant 0 : index
    %c0_46 = arith.constant 0 : index
    %c0_47 = arith.constant 0 : index
    %55 = vector.load %arg8[%c0_44, %c0_45, %c0_46, %c0_47] : memref<1x1x72x128xf32, #tpu.memory_space<vmem>>, vector<1x1x72x128xf32>
    %56 = vector.shape_cast %55 : vector<1x1x72x128xf32> to vector<72x128xf32>
    %57 = vector.shape_cast %54 : vector<72x128xf32> to vector<1x1x72x128xf32>
    tpu.vector_store %arg8[%c0_44, %c0_45, %c0_46, %c0_47], %57 {strides = array<i32>} : memref<1x1x72x128xf32, #tpu.memory_space<vmem>>, vector<1x1x72x128xf32>,
    return
  }
  func.func @transform_0(%arg0: i32, %arg1: i32) -> (i32, i32, i32, i32) {
    %c0_i32 = arith.constant 0 : i32
    %c0_i32_0 = arith.constant 0 : i32
    %c0_i32_1 = arith.constant 0 : i32
    return %arg0, %arg1, %c0_i32, %c0_i32_0 : i32, i32, i32, i32
  }
  func.func @transform_1(%arg0: i32, %arg1: i32) -> (i32, i32, i32, i32) {
    %c0_i32 = arith.constant 0 : i32
    %c0_i32_0 = arith.constant 0 : i32
    %c0_i32_1 = arith.constant 0 : i32
    return %arg0, %arg1, %c0_i32, %c0_i32_0 : i32, i32, i32, i32
  }
  func.func @transform_2(%arg0: i32, %arg1: i32) -> (i32, i32, i32, i32) {
    %c0_i32 = arith.constant 0 : i32
    %c0_i32_0 = arith.constant 0 : i32
    %c0_i32_1 = arith.constant 0 : i32
    return %arg0, %arg1, %c0_i32, %c0_i32_0 : i32, i32, i32, i32
  }
  func.func @transform_3(%arg0: i32, %arg1: i32) -> (i32, i32, i32, i32) {
    %c0_i32 = arith.constant 0 : i32
    %c0_i32_0 = arith.constant 0 : i32
    %c0_i32_1 = arith.constant 0 : i32
    return %arg0, %arg1, %c0_i32, %c0_i32_0 : i32, i32, i32, i32
  }
  func.func @transform_4(%arg0: i32, %arg1: i32) -> (i32, i32, i32) {
    %c0_i32 = arith.constant 0 : i32
    %c0_i32_0 = arith.constant 0 : i32
    %c0_i32_1 = arith.constant 0 : i32
    %c0_i32_2 = arith.constant 0 : i32
    return %c0_i32, %c0_i32_0, %c0_i32_1 : i32, i32, i32
  }
  func.func @transform_5(%arg0: i32, %arg1: i32) -> (i32, i32) {
    %c0_i32 = arith.constant 0 : i32
    %c0_i32_0 = arith.constant 0 : i32
    %c0_i32_1 = arith.constant 0 : i32
    return %c0_i32, %c0_i32_0 : i32, i32
  }
  func.func @transform_6(%arg0: i32, %arg1: i32) -> (i32, i32, i32, i32) {
    %c0_i32 = arith.constant 0 : i32
    %c0_i32_0 = arith.constant 0 : i32
    %c0_i32_1 = arith.constant 0 : i32
    return %arg0, %arg1, %c0_i32, %c0_i32_0 : i32, i32, i32, i32
  }
}

</mosaic_0001>

<bundles_post_ra>
// kernel: tpu_custom_call.1
= control target key start
LH: loop header
LB: loop body
LE: loop exit
PB: predicated region body
PF: predicated region fallthrough
CT: control target
= control target key end

     0   :  { %s4477_s0 = inlined_call_operand.hbm [shape: f32[2,1,88,128], index: 0, kind: input, shape index: {}]   ;;  %s4478_s1 = inlined_call_operand.hbm [shape: f32[2,1,88,128], index: 1, kind: input, shape index: {}]   ;;  %s4479_s2 = inlined_call_operand.hbm [shape: f32[2,1,88,128], index: 2, kind: input, shape index: {}]   ;;  %s4480_s3 = inlined_call_operand.hbm [shape: f32[2,1,88,128], index: 3, kind: input, shape index: {}]   ;;  %s4481_s4 = inlined_call_operand.hbm [shape: f32[9,128,128], index: 4, kind: input, shape index: {}]   ;;  %s4482_s5 = inlined_call_operand.hbm [shape: f32[1,128], index: 5, kind: input, shape index: {}]   ;;  %s4483_s6 = inlined_call_operand.hbm [shape: f32[2,1,72,128], index: 6, kind: output, shape index: {}]  }
   0x1   :  { %4506 = sst [smem:[#allocation25_spill]] %s4478_s1 }
   0x2   :  { %4507 = sst [smem:[#allocation26_spill]] %s4481_s4 }
   0x3   :  { %4508 = sst [smem:[#allocation27_spill]] %s4483_s6 }
   0x4   :  { %11 = vsyncpa [#allocation3], 0 }
   0x5   :  { %13 = vsyncpa [#allocation3 + $0x1], 0 }
   0x6   :  { %14 = vsyncpa [#allocation6], 0 }
   0x7   :  { %16 = vsyncpa [#allocation6 + $0x1], 0 }
   0x8   :  { %17 = vsyncpa [#allocation9], 0 }
   0x9   :  { %19 = vsyncpa [#allocation9 + $0x1], 0 }
   0xa   :  { %20 = vsyncpa [#allocation12], 0 }
   0xb   :  { %21 = vsyncpa [#allocation4], 0 }
   0xc   :  { %23 = vsyncpa [#allocation4 + $0x1], 0  ;;  %s3506_s21 = smov 0   ;;  %s3508_s22 = smov 0  }
   0xd   :  { %s3510_s23 = smov 0   ;;  %s3512_s24 = smov 0  }
   0xe   :  { %s3514_s25 = smov 0   ;;  %s3516_s26 = smov 0  }
   0xf LB: > { %4509 = sst [smem:[#allocation20_spill]] %s3435_s21  ;;  %s3537_s27 = sadd.s32 4294967295, %s3455_s26   ;;  %s3455_s26 = sphi %s3516_s26, %s29_s26   ;;  %s3451_s25 = sphi %s3514_s25, %s4551_s25   ;;  %s3447_s24 = sphi %s3512_s24, %s4550_s24   ;;  %s3443_s23 = sphi %s3510_s23, %s4554_s23   ;;  %s3439_s22 = sphi %s3508_s22, %s4553_s22   ;;  %s3435_s21 = sphi %s3506_s21, %s4552_s21  }
  0x10   : > { %4510 = sst [smem:[#allocation21_spill]] %s3451_s25  ;;  %s2061_s28 = sadd.s32 4294967294, %s3455_s26  }
  0x11   : > { %p57_p0 = scmp.ne.s32.totalorder %s3443_s23, %s3439_s22  ;;  %p58_p1 = scmp.eq.s32.totalorder %s3455_s26, 0 }
  0x12   : > { %p63_p2 = scmp.ne.s32.totalorder %s3439_s22, %s3435_s21  ;;  %p4484_p3 = scmp.eq.s32.totalorder %s3537_s27, 0 }
  0x13   : > { %p215_p4 = scmp.eq.s32.totalorder %s3537_s27, 1  ;;  %p3548_p5 = por %p58_p1, %p57_p0 }
  0x14   : > { %p221_p6 = scmp.eq.s32.totalorder %s2061_s28, 1  ;;  %p3554_p7 = por %p4484_p3, %p63_p2 }
  0x15   : > { %p3558_p8 = por %p215_p4, %p57_p0  ;;  %p2062_p10 = scmp.ge.s32.totalorder %s3455_s26, 1 }
  0x16   : > { %s4512_s7 = scalar_select %p3554_p7, 1, 0 }
  0x17   : > { %s4513_s8 = scalar_select %p3558_p8, 1, 0 }
  0x18   : > { %p3562_p9 = por %p221_p6, %p63_p2  ;;  %p228_p11 = scmp.lt.s32.totalorder %s3455_s26, 3 }
  0x19   : > { %s3457_s11 = smov [#allocation10]   ;;  %s41_s14 = sadd.s32 1, %s3451_s25 }
  0x1a   : > { %s4514_s9 = scalar_select %p3562_p9, 1, 0 }
  0x1b   : > { %p3568_p12 = pnand %p2062_p10, %p228_p11  ;;  %s240_s12 = sshll.u32 %s3457_s11, 4  ;;  %s3572_s12 = int_to_ptr.vmem [resolvable:$true] %s240_s12 }
  0x1c   : > { %4515 = sst [smem:[#allocation22_spill]] %s4514_s9  ;;  %s4489_s15 = sand.u32 1, %s3443_s23  }
  0x1d   : > { %s4516_s10 = scalar_select %p3568_p12, 1, 0 }
  0x1e   : > { %p3094_p13 = pneg %p3568_p12  ;;  %p3586_p4 = scmp.ge.s32.totalorder %s41_s14, 2 }
  0x1f   : > { %s4519_s4 = sld [smem:[#allocation26_spill]] }
  0x20   : > { %p3580_p2 = pnand %p3094_p13, %p4484_p3 }
  0x22   : > { %s4517_s13 = scalar_select %p3580_p2, 1, 0 }
  0x23   : > { %p4497_p10 = pneg %p3580_p2 }
  0x25   : > { %s3181_s19 = scalar_lea.hbm %s4519_s4, 18432 }
  0x26   : > { %p3182_p6 = scmp.ne.s32.totalorder %s4519_s4, %s3181_s19  ;;  %p3188_p0 = scmp.lt.u32.totalorder %s3181_s19, %s4519_s4 }
  0x28   : > { %p3184_p11 = pnand %p4497_p10, %p3182_p6 }
  0x2a   : > { %p3185_p13 = pneg %p3184_p11 }
  0x2c   : > { %p3190_p3 = pnand %p3188_p0, %p3185_p13 }
  0x2e   : > { %3193 = shalt.err (!%p3190_p3)
}
  0x2f   : > { %s3194_s17 = scalar_lea.vmem %s3572_s12, 18432  ;;  %p3202_p7 = scmp.lt.s32.totalorder %s3572_s12, %s3572_s12 }
  0x30   : > { %p3195_p1 = scmp.ne.s32.totalorder %s3572_s12, %s3194_s17  ;;  %p3203_p6 = scmp.lt.s32.totalorder %s3194_s17, %s3194_s17 }
  0x32   : > { %p3197_p9 = pnand %p3195_p1, %p4497_p10  ;;  %p3204_p11 = por %p3203_p6, %p3202_p7 }
  0x34   : > { %p3198_p8 = pneg %p3197_p9 }
  0x36   : > { %p3205_p12 = pnand %p3204_p11, %p3198_p8 }
  0x38   : > { %3208 = shalt.err (!%p3205_p12)
}
  0x39   : > { %s4490_s29 = smov 128   ;;  %s4492_s18 = smov 8  }
  0x3a   : > { %3097 = dma.hbm_to_vmem [thread:$0]  (!%p3580_p2), %s4519_s4, 18432, %s3572_s12, [#allocation9], %s4490_s29, %s4490_s29, %s4492_s18  }
  0x3b   : > { %s4556_s14 = smov (%p3586_p4, %s41_s14), 0  ;;  %s3626_s28 = smul.u32 88, %s4489_s15 }
  0x3c   : > { %4520 = sst [smem:[#allocation23_spill]] %s4556_s14  ;;  %p4521_p3 = scmp.lt.s32.totalorder %s3455_s26, 2 }
  0x3d   : > { %s45_s17 = ssub.s32 %s3451_s25, %s4556_s14  ;;  %s3639_s9 = smul.u32 1408, %s3451_s25 }
  0x3e   : > { %p3632_p7 = pnand %p4521_p3, %p3548_p5  ;;  %p48_p8 = scmp.eq.s32.totalorder %s45_s17, 0 }
  0x3f   : > { %s4496_s12 = sand.u32 1, %s3455_s26   ;;  %s4523_s16 = sadd.s32 1, %s3443_s23 }
  0x40   : > { %s4522_s11 = scalar_select %p3632_p7, 1, 0 }
  0x41   : > { %s3645_s19 = scalar_select %p48_p8, %s3443_s23, %s4523_s16  }
  0x42   : > { %s4525_s1 = sld [smem:[#allocation25_spill]]  ;;  %s292_s29 = scalar_lea.vmem [#allocation5], %s3626_s28 }
  0x43   : > { %4524 = sst [smem:[#allocation24_spill]] %s3645_s19  ;;  %s301_s18 = sshll.u32 %s292_s29, 4  ;;  %s3654_s18 = int_to_ptr.vmem [resolvable:$true] %s301_s18 }
  0x44   : > { %s3658_s4 = scalar_lea.sflag [#allocation6], %s4496_s12  ;;  %p3664_p9 = pneg %p3632_p7 }
  0x46   : > { %s4526_s16 = scalar_select %p3664_p9, 1, 0 }
  0x48   : > { %s3651_s30 = scalar_lea.hbm %s4525_s1, %s3639_s9  ;;  %s3214_s29 = scalar_lea.hbm %s4525_s1, 2816 }
  0x49   : > { %s3209_s17 = scalar_lea.hbm %s3651_s30, 1408  ;;  %p3215_p1 = scmp.lt.u32.totalorder %s3651_s30, %s4525_s1 }
  0x4a   : > { %p3210_p5 = scmp.ne.s32.totalorder %s3651_s30, %s3209_s17  ;;  %p3216_p4 = scmp.lt.u32.totalorder %s3214_s29, %s3209_s17 }
  0x4b   : > { %p3218_p6 = scmp.lt.u32.totalorder %s3209_s17, %s3651_s30 }
  0x4c   : > { %p3212_p12 = pnand %p3664_p9, %p3210_p5  ;;  %p3217_p13 = por %p3216_p4, %p3215_p1 }
  0x4e   : > { %p3213_p0 = pneg %p3212_p12  ;;  %p3219_p11 = por %p3218_p6, %p3217_p13 }
  0x50   : > { %p3220_p3 = pnand %p3219_p11, %p3213_p0 }
  0x52   : > { %3223 = shalt.err (!%p3220_p3)
}
  0x53   : > { %s3224_s12 = scalar_lea.vmem %s3654_s18, 1408  ;;  %s3460_s15 = smov [#allocation5]  }
  0x54   : > { %p3225_p8 = scmp.ne.s32.totalorder %s3654_s18, %s3224_s12  ;;  %s3229_s20 = sshll.u32 %s3460_s15, 4  ;;  %s3230_s20 = int_to_ptr.vmem [resolvable:$false] %s3229_s20 }
  0x55   : > { %s3231_s25 = scalar_lea.vmem %s3230_s20, 2816  ;;  %p3232_p10 = scmp.lt.s32.totalorder %s3654_s18, %s3230_s20 }
  0x56   : > { %p3227_p5 = pnand %p3225_p8, %p3664_p9  ;;  %p3233_p2 = scmp.lt.s32.totalorder %s3231_s25, %s3224_s12 }
  0x58   : > { %p3228_p12 = pneg %p3227_p5  ;;  %p3234_p1 = por %p3233_p2, %p3232_p10 }
  0x5a   : > { %p3235_p4 = pnand %p3234_p1, %p3228_p12 }
  0x5c   : > { %3238 = shalt.err (!%p3235_p4)
}
  0x5d   : > { %s4527_s14 = smov 8   ;;  %s4528_s17 = smov 128  }
  0x5e   : > { %3107 = dma.hbm_to_vmem [thread:$0]  (!%p3632_p7), %s3651_s30, 1408, %s3654_s18, %s3658_s4, %s4528_s17, %s4528_s17, %s4527_s14  }
  0x5f   : > { %s3461_s29 = smov [#allocation11]   ;;  %s3239_s12 = scalar_lea.hbm %s4482_s5, 16 }
  0x60   : > { %s254_s1 = sshll.u32 %s3461_s29, 4  ;;  %p3240_p2 = scmp.ne.s32.totalorder %s4482_s5, %s3239_s12  ;;  %s255_s1 = int_to_ptr.vmem [resolvable:$true] %s254_s1 }
  0x61   : > { %p4529_p10 = scmp.ne.s32.totalorder %s4517_s13, 0  ;;  %p3246_p11 = scmp.lt.u32.totalorder %s3239_s12, %s4482_s5 }
  0x63   : > { %p4530_p0 = pneg %p4529_p10 }
  0x65   : > { %p3242_p13 = pnand %p3240_p2, %p4530_p0 }
  0x67   : > { %p3243_p6 = pneg %p3242_p13 }
  0x69   : > { %p3248_p3 = pnand %p3246_p11, %p3243_p6 }
  0x6b   : > { %3251 = shalt.err (!%p3248_p3)
}
  0x6c   : > { %s3252_s18 = scalar_lea.vmem %s255_s1, 16  ;;  %p4531_p5 = pmov %p4530_p0 }
  0x6d   : > { %p3253_p8 = scmp.ne.s32.totalorder %s255_s1, %s3252_s18  ;;  %s3259_s19 = scalar_lea.vmem %s255_s1, 32 }
  0x6e   : > { %p3260_p4 = scmp.lt.s32.totalorder %s255_s1, %s255_s1  ;;  %p3261_p7 = scmp.lt.s32.totalorder %s3259_s19, %s3252_s18 }
  0x6f   : > { %p3255_p12 = pnand %p3253_p8, %p4531_p5 }
  0x70   : > { %p3262_p9 = por %p3261_p7, %p3260_p4 }
  0x71   : > { %p3256_p1 = pneg %p3255_p12 }
  0x73   : > { %p3263_p0 = pnand %p3262_p9, %p3256_p1 }
  0x75   : > { %3266 = shalt.err (!%p3263_p0)
}
  0x76   : > { %3100 = dma.hbm_to_vmem [thread:$0]  (!%p4529_p10), %s4482_s5, 16, %s255_s1, [#allocation12]  }
  0x77   : > { %s3715_s15 = scalar_lea.hbm %s4477_s0, %s3639_s9  ;;  %s269_s12 = scalar_lea.vmem [#allocation2], %s3626_s28 }
  0x78   : > { %s278_s20 = sshll.u32 %s269_s12, 4  ;;  %s4532_s13 = sand.u32 1, %s3443_s23   ;;  %s3718_s20 = int_to_ptr.vmem [resolvable:$true] %s278_s20 }
  0x79   : > { %s3722_s25 = scalar_lea.sflag [#allocation3], %s4532_s13  ;;  %s3267_s18 = scalar_lea.hbm %s3715_s15, 1408 }
  0x7a   : > { %p3268_p7 = scmp.ne.s32.totalorder %s3715_s15, %s3267_s18  ;;  %p4533_p9 = scmp.ne.s32.totalorder %s4526_s16, 0 }
  0x7b   : > { %s3272_s30 = scalar_lea.hbm %s4477_s0, 2816  ;;  %p3273_p13 = scmp.lt.u32.totalorder %s3715_s15, %s4477_s0 }
  0x7c   : > { %p3270_p2 = pnand %p3268_p7, %p4533_p9  ;;  %p3274_p6 = scmp.lt.u32.totalorder %s3272_s30, %s3267_s18 }
  0x7d   : > { %p3276_p3 = scmp.lt.u32.totalorder %s3267_s18, %s3715_s15 }
  0x7e   : > { %p3271_p10 = pneg %p3270_p2  ;;  %p3275_p11 = por %p3274_p6, %p3273_p13 }
  0x80   : > { %p3277_p8 = por %p3276_p3, %p3275_p11 }
  0x82   : > { %p3278_p5 = pnand %p3277_p8, %p3271_p10 }
  0x84   : > { %3281 = shalt.err (!%p3278_p5)
}
  0x85   : > { %s3282_s29 = scalar_lea.vmem %s3718_s20, 1408  ;;  %s3462_s12 = smov [#allocation2]  }
  0x86   : > { %p3283_p12 = scmp.ne.s32.totalorder %s3718_s20, %s3282_s29  ;;  %s3287_s13 = sshll.u32 %s3462_s12, 4  ;;  %s3288_s13 = int_to_ptr.vmem [resolvable:$false] %s3287_s13 }
  0x87   : > { %s3289_s1 = scalar_lea.vmem %s3288_s13, 2816  ;;  %p3290_p0 = scmp.lt.s32.totalorder %s3718_s20, %s3288_s13 }
  0x88   : > { %p3285_p1 = pnand %p3283_p12, %p4533_p9  ;;  %p3291_p7 = scmp.lt.s32.totalorder %s3289_s1, %s3282_s29 }
  0x8a   : > { %p3286_p4 = pneg %p3285_p1  ;;  %p3292_p2 = por %p3291_p7, %p3290_p0 }
  0x8c   : > { %p3293_p13 = pnand %p3292_p2, %p3286_p4 }
  0x8e   : > { %3296 = shalt.err (!%p3293_p13)
}
  0x8f   : > { %p4534_p10 = scmp.ne.s32.totalorder %s4522_s11, 0  ;;  %s3753_s30 = scalar_lea.hbm %s4479_s2, %s3639_s9 }
  0x90   : > { %s315_s6 = scalar_lea.vmem [#allocation7], %s3626_s28  ;;  %s3297_s29 = scalar_lea.hbm %s3753_s30, 1408 }
  0x91   : > { %3104 = dma.hbm_to_vmem [thread:$0]  (!%p4534_p10), %s3715_s15, 1408, %s3718_s20, %s3722_s25, %s4528_s17, %s4528_s17, %s4527_s14  }
  0x92   : > { %s324_s21 = sshll.u32 %s315_s6, 4  ;;  %p3298_p6 = scmp.ne.s32.totalorder %s3753_s30, %s3297_s29  ;;  %s3756_s21 = int_to_ptr.vmem [resolvable:$true] %s324_s21 }
  0x93   : > { %s3302_s20 = scalar_lea.hbm %s4479_s2, 2816  ;;  %p3303_p8 = scmp.lt.u32.totalorder %s3753_s30, %s4479_s2 }
  0x94   : > { %p3300_p11 = pnand %p3298_p6, %p4533_p9  ;;  %p3304_p5 = scmp.lt.u32.totalorder %s3302_s20, %s3297_s29 }
  0x95   : > { %p3306_p1 = scmp.lt.u32.totalorder %s3297_s29, %s3753_s30 }
  0x96   : > { %p3301_p3 = pneg %p3300_p11  ;;  %p3305_p12 = por %p3304_p5, %p3303_p8 }
  0x98   : > { %p3307_p4 = por %p3306_p1, %p3305_p12 }
  0x9a   : > { %p3308_p0 = pnand %p3307_p4, %p3301_p3 }
  0x9c   : > { %3311 = shalt.err (!%p3308_p0)
}
  0x9d   : > { %s3312_s1 = scalar_lea.vmem %s3756_s21, 1408  ;;  %s3463_s18 = smov [#allocation7]  }
  0x9e   : > { %p3313_p7 = scmp.ne.s32.totalorder %s3756_s21, %s3312_s1  ;;  %s3317_s19 = sshll.u32 %s3463_s18, 4  ;;  %s3318_s19 = int_to_ptr.vmem [resolvable:$false] %s3317_s19 }
  0x9f   : > { %s3319_s6 = scalar_lea.vmem %s3318_s19, 2816  ;;  %p3320_p6 = scmp.lt.s32.totalorder %s3756_s21, %s3318_s19 }
  0xa0   : > { %p3315_p2 = pnand %p3313_p7, %p4533_p9  ;;  %p3321_p11 = scmp.lt.s32.totalorder %s3319_s6, %s3312_s1 }
  0xa2   : > { %p3316_p13 = pneg %p3315_p2  ;;  %p3322_p8 = por %p3321_p11, %p3320_p6 }
  0xa4   : > { %p3323_p5 = pnand %p3322_p8, %p3316_p13 }
  0xa6   : > { %3326 = shalt.err (!%p3323_p5)
}
  0xa7   : > { %3110 = dma.hbm_to_vmem [thread:$0]  (!%p4534_p10), %s3753_s30, 1408, %s3756_s21, %s3658_s4, %s4528_s17, %s4528_s17, %s4527_s14  }
  0xa8   : > { %s3787_s15 = scalar_lea.hbm %s4480_s3, %s3639_s9  ;;  %s338_s20 = scalar_lea.vmem [#allocation8], %s3626_s28 }
  0xa9   : > { %s347_s25 = sshll.u32 %s338_s20, 4  ;;  %s4535_s13 = sand.u32 1, %s3455_s26   ;;  %s3790_s25 = int_to_ptr.vmem [resolvable:$true] %s347_s25 }
  0xaa   : > { %s3794_s1 = scalar_lea.sflag [#allocation9], %s4535_s13  ;;  %s3327_s18 = scalar_lea.hbm %s3787_s15, 1408 }
  0xab   : > { %p3328_p3 = scmp.ne.s32.totalorder %s3787_s15, %s3327_s18  ;;  %s3332_s9 = scalar_lea.hbm %s4480_s3, 2816 }
  0xac   : > { %p3333_p4 = scmp.lt.u32.totalorder %s3787_s15, %s4480_s3  ;;  %p3334_p0 = scmp.lt.u32.totalorder %s3332_s9, %s3327_s18 }
  0xad   : > { %p3330_p12 = pnand %p3328_p3, %p4533_p9  ;;  %p3336_p2 = scmp.lt.u32.totalorder %s3327_s18, %s3787_s15 }
  0xae   : > { %p3335_p7 = por %p3334_p0, %p3333_p4 }
  0xaf   : > { %p3331_p1 = pneg %p3330_p12 }
  0xb0   : > { %p3337_p13 = por %p3336_p2, %p3335_p7 }
  0xb2   : > { %p3338_p6 = pnand %p3337_p13, %p3331_p1 }
  0xb4   : > { %3341 = shalt.err (!%p3338_p6)
}
  0xb5   : > { %s3342_s28 = scalar_lea.vmem %s3790_s25, 1408  ;;  %s3464_s6 = smov [#allocation8]  }
  0xb6   : > { %p3343_p11 = scmp.ne.s32.totalorder %s3790_s25, %s3342_s28  ;;  %s3347_s29 = sshll.u32 %s3464_s6, 4  ;;  %s3348_s29 = int_to_ptr.vmem [resolvable:$false] %s3347_s29 }
  0xb7   : > { %s3349_s12 = scalar_lea.vmem %s3348_s29, 2816  ;;  %p3350_p3 = scmp.lt.s32.totalorder %s3790_s25, %s3348_s29 }
  0xb8   : > { %p3345_p8 = pnand %p3343_p11, %p4533_p9  ;;  %p3351_p12 = scmp.lt.s32.totalorder %s3349_s12, %s3342_s28 }
  0xba   : > { %p3346_p5 = pneg %p3345_p8  ;;  %p3352_p4 = por %p3351_p12, %p3350_p3 }
  0xbc   : > { %p3353_p0 = pnand %p3352_p4, %p3346_p5 }
  0xbe   : > { %3356 = shalt.err (!%p3353_p0)
}
  0xbf   : > { %3113 = dma.hbm_to_vmem [thread:$0]  (!%p4534_p10), %s3787_s15, 1408, %s3790_s25, %s3794_s1, %s4528_s17, %s4528_s17, %s4527_s14  }
  0xc0   : > { %p4536_p9 = scmp.ne.s32.totalorder %s4516_s10, 0 }
  0xc1   : > { %s3824_s16 = sand.u32 (!%p4536_p9), 1, %s3439_s22   ;;  %p4537_p1 = scmp.ne.s32.totalorder (!%p4536_p9), %s4512_s7, 0 }
  0xc2   : > { %359 = sbr.rel (%p4536_p9) target bundleno = 640 (0x280), region = 44  ;;  %s362_s13 = scalar_lea.sflag (!%p4536_p9), [#allocation3], %s3824_s16 }
  0xc3   : > { %s3073_s20 = smul.u32 (!%p4536_p9), 88, %s3824_s16 }
  0xc5   : > { %s3828_s18 = scalar_lea.vmem (!%p4536_p9), [#allocation2], %s3073_s20 }
  0xc9   : > { %3410 = dma.done.wait (%p4537_p1), %s362_s13, 1408  }
  0xca   : > { %3412 = vsyncadd (%p4537_p1), %s362_s13, 4294965888  ;;  %s370_s11 = sand.u32 1, %s3537_s27   ;;  %s3835_s14 = scalar_lea.vmem [#allocation5], %s3073_s20 }
  0xcb   : > { %s371_s10 = scalar_lea.sflag [#allocation6], %s370_s11 }
  0xcc   : > { %3414 = dma.done.wait (%p4537_p1), %s371_s10, 2816  }
  0xcd   : > { %3416 = vsyncadd (%p4537_p1), %s371_s10, 4294964480  ;;  %s3841_s17 = scalar_lea.vmem [#allocation7], %s3073_s20  ;;  %s389_s15 = scalar_lea.sflag [#allocation9], %s370_s11 }
  0xce   : > { %s3843_s25 = scalar_lea.vmem [#allocation8], %s3073_s20 }
  0xcf   : > { %3418 = dma.done.wait (%p4537_p1), %s389_s15, 1408  }
  0xd0   : > { %3420 = vsyncadd (%p4537_p1), %s389_s15, 4294965888  ;;  %p4538_p10 = scmp.eq.s32.totalorder %s3537_s27, 0 }
  0xd2   : > { %3422 = dma.done.wait (%p4538_p10), [#allocation9], 18432   ;;  %p4539_p7 = pmov %p4538_p10 }
  0xd4   : > { %3424 = vsyncadd (%p4539_p7), [#allocation9], 4294948864  ;;  %p4540_p2 = pmov %p4539_p7 }
  0xd6   : > { %3426 = dma.done.wait (%p4540_p2), [#allocation12], 16   ;;  %p4541_p13 = pmov %p4540_p2 }
  0xd7   : > { %v3465_v0 = vmov 0.0|0.0   ;;  %vm3466_vm0 = vmmov 0   ;;  %v3467_v1 = vmov 0.0   ;;  %v502_v2 = vld [vmem:[#allocation10 + $0x80] sm:$0xff]  ;;  %v503_v3 = vld [vmem:[#allocation10 + $0x88] sm:$0xff]  ;;  %v504_v7 = vld [vmem:[#allocation10 + $0x90] sm:$0xff] }
  0xd8   : > { %3428 = vsyncadd (%p4541_p13), [#allocation12], 4294967280  ;;  %2833 = vmatprep.subr.bf16.mxu0 %v3465_v0  ;;  %2857 = vmatprep.subr.bf16.mxu1 %v3465_v0  ;;  %v485_v4 = vld [vmem:[#allocation10] sm:$0xff]  ;;  %v2834_v5 = vpack.c.bf16 %v503_v3, %v502_v2  ;;  %v486_v6 = vld [vmem:[#allocation10 + $0x8] sm:$0xff]  ;;  %vm765_vm1 = vcmask 1046528   ;;  %vm1690_vm2 = vcmask 1045504  }
  0xd9   : > { %2334 = vmatprep.mubr.msk.f32.mxu0 %vm3466_vm0, %v3467_v1  ;;  %2393 = vmatprep.mubr.msk.f32.mxu1 %vm3466_vm0, %v3467_v1  ;;  %v505_v8 = vld [vmem:[#allocation10 + $0x98] sm:$0xff]  ;;  %v2858_v9 = vpack.c.bf16 %v486_v6, %v485_v4  ;;  %v487_v10 = vld [vmem:[#allocation10 + $0x10] sm:$0xff]  ;;  %v506_v14 = vld [vmem:[#allocation10 + $0xa0] sm:$0xff]  ;;  %s3074_s27 = smul.u32 72, %s3824_s16  ;;  %s4542_s21 = sld [smem:[#allocation27_spill]] }
  0xda   : > { %v488_v11 = vld [vmem:[#allocation10 + $0x18] sm:$0xff]  ;;  %2835 = vmatpush3.bf16.msra.mxu0 %v2834_v5  ;;  %v2837_v12 = vpack.c.bf16 %v505_v8, %v504_v7  ;;  %v507_v15 = vld [vmem:[#allocation10 + $0xa8] sm:$0xff]  ;;  %v489_v16 = vld [vmem:[#allocation10 + $0x20] sm:$0xff]  ;;  %s3075_s1 = smul.u32 1152, %s3447_s24  ;;  %s1864_s24 = scalar_lea.sflag [#allocation4], %s3824_s16 }
  0xdb   : > { %2859 = vmatpush3.bf16.msra.mxu1 %v2858_v9  ;;  %2836 = vmatprep.subr.bf16.mxu0 %v3465_v0  ;;  %v2861_v13 = vpack.c.bf16 %v488_v11, %v487_v10  ;;  %v490_v17 = vld [vmem:[#allocation10 + $0x28] sm:$0xff]  ;;  %v2840_v18 = vpack.c.bf16 %v507_v15, %v506_v14  ;;  %v508_v20 = vld [vmem:[#allocation10 + $0xb0] sm:$0xff]  ;;  %v509_v21 = vld [vmem:[#allocation10 + $0xb8] sm:$0xff]  ;;  %s4408_s7 = scalar_lea.vmem [#allocation13], %s3074_s27  ;;  %p4544_p11 = scmp.ne.s32.totalorder %s4513_s8, 0 }
  0xdc   : > { %2860 = vmatprep.subr.bf16.mxu1 %v3465_v0  ;;  %v2864_v19 = vpack.c.bf16 %v490_v17, %v489_v16  ;;  %v491_v22 = vld [vmem:[#allocation10 + $0x30] sm:$0xff]  ;;  %v492_v23 = vld [vmem:[#allocation10 + $0x38] sm:$0xff]  ;;  %v2843_v24 = vpack.c.bf16 %v509_v21, %v508_v20  ;;  %v510_v26 = vld [vmem:[#allocation10 + $0xc0] sm:$0xff]  ;;  %s1879_s4 = sshll.u32 %s4408_s7, 4  ;;  %s3468_s29 = smov [#allocation13]   ;;  %s4427_s4 = int_to_ptr.vmem [resolvable:$true] %s1879_s4 }
  0xdd   : > { %v2867_v25 = vpack.c.bf16 %v492_v23, %v491_v22  ;;  %v511_v27 = vld [vmem:[#allocation10 + $0xc8] sm:$0xff]  ;;  %v493_v28 = vld [vmem:[#allocation10 + $0x40] sm:$0xff]  ;;  %v3870_v30 = vld [vmem:[%s3835_s14 + $0x8] sm:$0xff]  ;;  %s3357_s6 = scalar_lea.vmem %s4427_s4, 1152  ;;  %s3361_s12 = sshll.u32 %s3468_s29, 4  ;;  %s3362_s12 = int_to_ptr.vmem [resolvable:$false] %s3361_s12 }
  0xde   : > { %2838 = vmatpush3.bf16.msra.mxu0 %v2837_v12  ;;  %v494_v29 = vld [vmem:[#allocation10 + $0x48] sm:$0xff]  ;;  %v1526_v31 = vrot.slane %v3870_v30, 1  ;;  %v3874_v32 = vld [vmem:[%s3835_s14 + $0x10] sm:$0xff]  ;;  %v2846_v33 = vpack.c.bf16 %v511_v27, %v510_v26  ;;  %v512_v36 = vld [vmem:[#allocation10 + $0xd0] sm:$0xff]  ;;  %p3358_p6 = scmp.ne.s32.totalorder %s4427_s4, %s3357_s6  ;;  %s3363_s20 = scalar_lea.vmem %s3362_s12, 2304 }
  0xdf   : > { %2862 = vmatpush3.bf16.msra.mxu1 %v2861_v13  ;;  %2839 = vmatprep.subr.bf16.mxu0 %v3465_v0  ;;  %v1527_v34 = vrot.slane %v3874_v32, 1  ;;  %v2870_v35 = vpack.c.bf16 %v494_v29, %v493_v28  ;;  %v513_v37 = vld [vmem:[#allocation10 + $0xd8] sm:$0xff]  ;;  %v3879_v38 = vld [vmem:[%s3835_s14 + $0x18] sm:$0xff]  ;;  %v495_v39 = vld [vmem:[#allocation10 + $0x50] sm:$0xff]  ;;  %s4543_s19 = smov %s4542_s21  ;;  %s4425_s28 = scalar_lea.hbm %s4542_s21, %s3075_s1 }
  0xe0   : > { %2863 = vmatprep.subr.bf16.mxu1 %v3465_v0  ;;  %v496_v40 = vld [vmem:[#allocation10 + $0x58] sm:$0xff]  ;;  %v1529_v41 = vrot.slane %v3879_v38, 1  ;;  %v3884_v42 = vld [vmem:[%s3835_s14 + $0x20] sm:$0xff]  ;;  %v2849_v44 = vpack.c.bf16 %v513_v37, %v512_v36  ;;  %v514_v47 = vld [vmem:[#allocation10 + $0xe0] sm:$0xff]  ;;  %p3359_p8 = pnand %p3358_p6, %p4544_p11  ;;  %p3364_p3 = scmp.lt.s32.totalorder %s4427_s4, %s3362_s12 }
  0xe1   : > { %v3887_v43 = vsel %vm765_vm1, %v1526_v31, %v1527_v34  ;;  %v1531_v45 = vrot.slane %v3884_v42, 1  ;;  %v2873_v46 = vpack.c.bf16 %v496_v40, %v495_v39  ;;  %v515_v48 = vld [vmem:[#allocation10 + $0xe8] sm:$0xff]  ;;  %v497_v50 = vld [vmem:[#allocation10 + $0x60] sm:$0xff]  ;;  %v3896_v52 = vld [vmem:[%s3835_s14 + $0x28] sm:$0xff]  ;;  %p3365_p12 = scmp.lt.s32.totalorder %s3363_s20, %s3357_s6 }
  0xe2   : > { %2841 = vmatpush3.bf16.msra.mxu0 %v2840_v18  ;;  %v3892_v49 = vsel %vm765_vm1, %v1527_v34, %v1529_v41  ;;  %v498_v51 = vld [vmem:[#allocation10 + $0x68] sm:$0xff]  ;;  %v2852_v53 = vpack.c.bf16 %v515_v48, %v514_v47  ;;  %v1533_v54 = vrot.slane %v3896_v52, 1  ;;  %v516_v57 = vld [vmem:[#allocation10 + $0xf0] sm:$0xff]  ;;  %v517_v58 = vld [vmem:[#allocation10 + $0xf8] sm:$0xff]  ;;  %p3360_p5 = pneg %p3359_p8 }
  0xe3   : > { %2865 = vmatpush3.bf16.msra.mxu1 %v2864_v19  ;;  %2842 = vmatprep.subr.bf16.mxu0 %v3465_v0  ;;  %v3900_v55 = vsel %vm765_vm1, %v1529_v41, %v1531_v45  ;;  %v2876_v56 = vpack.c.bf16 %v498_v51, %v497_v50  ;;  %v499_v59 = vld [vmem:[#allocation10 + $0x70] sm:$0xff]  ;;  %v500_v60 = vld [vmem:[#allocation10 + $0x78] sm:$0xff]  ;;  %v2855_v63 = vpack.c.bf16 %v517_v58, %v516_v57  ;;  %v739_v4 = vld [vmem:[#allocation10 + $0x100] sm:$0xff]  ;;  %p3366_p4 = por %p3365_p12, %p3364_p3 }
  0xe4   : > { %2866 = vmatprep.subr.bf16.mxu1 %v3465_v0  ;;  %v3905_v61 = vld [vmem:[%s3835_s14 + $0x30] sm:$0xff]  ;;  %v3909_v2 = vsel %vm765_vm1, %v1531_v45, %v1533_v54  ;;  %v2879_v3 = vpack.c.bf16 %v500_v60, %v499_v59  ;;  %v740_v5 = vld [vmem:[#allocation10 + $0x108] sm:$0xff]  ;;  %v741_v14 = vld [vmem:[#allocation10 + $0x110] sm:$0xff] }
  0xe5   : > { %v1535_v62 = vrot.slane %v3905_v61, 1  ;;  %v3914_v6 = vld [vmem:[%s3835_s14 + $0x38] sm:$0xff]  ;;  %v455_v11 = vld [vmem:[%s3835_s14] sm:$0xff]  ;;  %v2882_v12 = vpack.c.bf16 %v740_v5, %v739_v4  ;;  %v3922_v13 = vld [vmem:[%s3828_s18] sm:$0xff]  ;;  %p3367_p0 = pnand %p3366_p4, %p3360_p5 }
  0xe6   : > { %2844 = vmatpush3.bf16.msra.mxu0 %v2843_v24  ;;  %v914_v7 = vld [vmem:[#allocation10 + $0x180] sm:$0xff]  ;;  %v915_v8 = vld [vmem:[#allocation10 + $0x188] sm:$0xff]  ;;  %v1537_v9 = vrot.slane %v3914_v6, 1  ;;  %v742_v15 = vld [vmem:[#allocation10 + $0x118] sm:$0xff] }
  0xe7   : > { %2868 = vmatpush3.bf16.msra.mxu1 %v2867_v25  ;;  %2845 = vmatprep.subr.bf16.mxu0 %v3465_v0  ;;  %v3918_v10 = vsel %vm765_vm1, %v1533_v54, %v1535_v62  ;;  %v2906_v16 = vpack.c.bf16 %v915_v8, %v914_v7  ;;  %v3927_v17 = vld [vmem:[%s3835_s14 + $0x40] sm:$0xff]  ;;  %v917_v19 = vld [vmem:[#allocation10 + $0x198] sm:$0xff]  ;;  %v2885_v22 = vpack.c.bf16 %v742_v15, %v741_v14  ;;  %v3939_v23 = vld [vmem:[%s3828_s18 + $0x8] sm:$0xff] }
  0xe8   : > { %2869 = vmatprep.subr.bf16.mxu1 %v3465_v0  ;;  %v916_v18 = vld [vmem:[#allocation10 + $0x190] sm:$0xff]  ;;  %v1539_v20 = vrot.slane %v3927_v17, 1  ;;  %v3931_v21 = vsel %vm765_vm1, %v1535_v62, %v1537_v9  ;;  %v743_v24 = vld [vmem:[#allocation10 + $0x120] sm:$0xff]  ;;  %v744_v25 = vld [vmem:[#allocation10 + $0x128] sm:$0xff] }
  0xe9   : > { %v2909_v26 = vpack.c.bf16 %v917_v19, %v916_v18  ;;  %v918_v27 = vld [vmem:[#allocation10 + $0x1a0] sm:$0xff]  ;;  %v919_v28 = vld [vmem:[#allocation10 + $0x1a8] sm:$0xff]  ;;  %v2888_v31 = vpack.c.bf16 %v744_v25, %v743_v24  ;;  %v745_v34 = vld [vmem:[#allocation10 + $0x130] sm:$0xff] }
  0xea   : > { %2847 = vmatpush3.bf16.msra.mxu0 %v2846_v33  ;;  %v3947_v29 = vsel %vm765_vm1, %v1537_v9, %v1539_v20  ;;  %v2912_v33 = vpack.c.bf16 %v919_v28, %v918_v27  ;;  %v920_v36 = vld [vmem:[#allocation10 + $0x1b0] sm:$0xff]  ;;  %v921_v37 = vld [vmem:[#allocation10 + $0x1b8] sm:$0xff]  ;;  %v747_v41 = vld [vmem:[#allocation10 + $0x140] sm:$0xff] }
  0xeb   : > { %2871 = vmatpush3.bf16.msra.mxu1 %v2870_v35  ;;  %2848 = vmatprep.subr.bf16.mxu0 %v3465_v0  ;;  %v746_v35 = vld [vmem:[#allocation10 + $0x138] sm:$0xff]  ;;  %v2915_v45 = vpack.c.bf16 %v921_v37, %v920_v36  ;;  %v3972_v47 = vld [vmem:[%s3828_s18 + $0x30] sm:$0xff]  ;;  %v922_v50 = vld [vmem:[#allocation10 + $0x1c0] sm:$0xff] }
  0xec   : > { %2872 = vmatprep.subr.bf16.mxu1 %v3465_v0  ;;  %v3966_v39 = vld [vmem:[%s3828_s18 + $0x18] sm:$0xff]  ;;  %v2891_v40 = vpack.c.bf16 %v746_v35, %v745_v34  ;;  %v923_v51 = vld [vmem:[#allocation10 + $0x1c8] sm:$0xff]  ;;  %v3992_v62 = vld [vmem:[%s3828_s18 + $0x40] sm:$0xff] }
  0xed   : > { %v3975_v48 = vld [vmem:[%s3828_s18 + $0x38] sm:$0xff]  ;;  %v2918_v58 = vpack.c.bf16 %v923_v51, %v922_v50  ;;  %v1704_v5 = vrot.slane %v3992_v62, 2  ;;  %v751_v14 = vld [vmem:[#allocation10 + $0x160] sm:$0xff]  ;;  %v752_v15 = vld [vmem:[#allocation10 + $0x168] sm:$0xff]  ;;  %v766_v50 = vrot.slane %v3922_v13, 1  ;;  %v767_v51 = vrot.slane %v3939_v23, 1 }
  0xee   : > { %2850 = vmatpush3.bf16.msra.mxu0 %v2849_v44  ;;  %v1702_v54 = vrot.slane %v3975_v48, 2  ;;  %v749_v59 = vld [vmem:[#allocation10 + $0x150] sm:$0xff]  ;;  %v750_v60 = vld [vmem:[#allocation10 + $0x158] sm:$0xff]  ;;  %v927_v18 = vld [vmem:[#allocation10 + $0x1e8] sm:$0xff] }
  0xef   : > { %2874 = vmatpush3.bf16.msra.mxu1 %v2873_v46  ;;  %2851 = vmatprep.subr.bf16.mxu0 %v3465_v0  ;;  %v748_v46 = vld [vmem:[#allocation10 + $0x148] sm:$0xff]  ;;  %v925_v4 = vld [vmem:[#allocation10 + $0x1d8] sm:$0xff]  ;;  %v2897_v8 = vpack.c.bf16 %v750_v60, %v749_v59  ;;  %v753_v27 = vld [vmem:[#allocation10 + $0x170] sm:$0xff] }
  0xf0   : > { %2875 = vmatprep.subr.bf16.mxu1 %v3465_v0  ;;  %v2894_v57 = vpack.c.bf16 %v748_v46, %v747_v41  ;;  %v4021_v19 = vsel %vm1690_vm2, %v1702_v54, %v1704_v5  ;;  %v754_v28 = vld [vmem:[#allocation10 + $0x178] sm:$0xff] }
  0xf1   : > { %v929_v34 = vld [vmem:[#allocation10 + $0x1f8] sm:$0xff] }
  0xf2   : > { %2853 = vmatpush3.bf16.msra.mxu0 %v2852_v53  ;;  %v1700_v53 = vrot.slane %v3972_v47, 2  ;;  %v4048_v36 = vld [vmem:[%s3835_s14 + $0x48] sm:$0xff]  ;;  %v4099_v59 = vld [vmem:[%s3841_s17] sm:$0xff] }
  0xf3   : > { %2877 = vmatpush3.bf16.msra.mxu1 %v2876_v56  ;;  %2854 = vmatprep.subr.bf16.mxu0 %v3465_v0  ;;  %v1694_v56 = vrot.slane %v3966_v39, 2  ;;  %v1541_v37 = vrot.slane %v4048_v36, 1  ;;  %v1053_v60 = vld [vmem:[#allocation10 + $0x218] sm:$0xff] }
  0xf4   : > { %2878 = vmatprep.subr.bf16.mxu1 %v3465_v0  ;;  %v4003_v7 = vsel %vm1690_vm2, %v1700_v53, %v1702_v54  ;;  %v1051_v54 = vld [vmem:[#allocation10 + $0x208] sm:$0xff] }
  0xf5   : > { %v4069_v46 = vsel %vm765_vm1, %v1539_v20, %v1541_v37  ;;  %v1050_v20 = vld [vmem:[#allocation10 + $0x200] sm:$0xff] }
  0xf6   : > { %2856 = vmatpush3.bf16.msra.mxu0 %v2855_v63 }
  0xf7   : > { %2880 = vmatpush3.bf16.msra.mxu1 %v2879_v3  ;;  %2881 = vmatprep.subr.bf16.mxu0 %v3465_v0  ;;  %v924_v3 = vld [vmem:[#allocation10 + $0x1d0] sm:$0xff] }
  0xf8   : > { %2905 = vmatprep.subr.bf16.mxu1 %v3465_v0 }
  0xf9   : > { %2335 = vmatmul.mubr.f32.vlgmr.msra.gmra.mrb[0].mxu0 %v455_v11 }
  0xfa   : > { %2394 = vmatmul.mubr.f32.vlgmr.msra.gmra.mrb[0].mxu1 %v3922_v13  ;;  %2883 = vmatpush3.bf16.msra.mxu0 %v2882_v12  ;;  %v2921_v12 = vpack.c.bf16 %v925_v4, %v924_v3  ;;  %v1188_v4 = vld [vmem:[#allocation10 + $0x290] sm:$0xff] }
  0xfb   : > { %2337 = vmatprep.mubr.msk.f32.mxu0 %vm3466_vm0, %v3467_v1  ;;  %2396 = vmatprep.mubr.msk.f32.mxu1 %vm3466_vm0, %v3467_v1 }
  0xfc   : > { %2884 = vmatprep.subr.bf16.mxu0 %v3465_v0  ;;  %2907 = vmatpush3.bf16.msra.mxu1 %v2906_v16  ;;  %v926_v16 = vld [vmem:[#allocation10 + $0x1e0] sm:$0xff] }
  0xfd   : > { %2338 = vmatmul.mubr.f32.gmra.mrb[2].mxu0 %v3870_v30  ;;  %2908 = vmatprep.subr.bf16.mxu1 %v3465_v0  ;;  %v3955_v30 = vld [vmem:[%s3828_s18 + $0x10] sm:$0xff] }
  0xfe   : > { %2397 = vmatmul.mubr.f32.gmra.mrb[2].mxu1 %v3939_v23  ;;  %2886 = vmatpush3.bf16.msra.mxu0 %v2885_v22  ;;  %v1692_v44 = vrot.slane %v3955_v30, 2  ;;  %v4027_v22 = vld [vmem:[%s3828_s18 + $0x48] sm:$0xff] }
  0xff   : > { %2340 = vmatprep.mubr.msk.f32.mxu0 %vm3466_vm0, %v3467_v1  ;;  %2399 = vmatprep.mubr.msk.f32.mxu1 %vm3466_vm0, %v3467_v1  ;;  %v1706_v25 = vrot.slane %v4027_v22, 2 }
 0x100   : > { %2887 = vmatprep.subr.bf16.mxu0 %v3465_v0  ;;  %2910 = vmatpush3.bf16.msra.mxu1 %v2909_v26  ;;  %v4014_v9 = vsel %vm1690_vm2, %v1692_v44, %v1694_v56  ;;  %v2924_v26 = vpack.c.bf16 %v927_v18, %v926_v16  ;;  %v1190_v16 = vld [vmem:[#allocation10 + $0x2a0] sm:$0xff]  ;;  %v1191_v18 = vld [vmem:[#allocation10 + $0x2a8] sm:$0xff] }
 0x101   : > { %2341 = vmatmul.mubr.f32.gmra.mrb[4].mxu0 %v3874_v32  ;;  %2911 = vmatprep.subr.bf16.mxu1 %v3465_v0  ;;  %v1691_v32 = vrot.slane %v3939_v23, 2  ;;  %v4042_v35 = vsel %vm1690_vm2, %v1704_v5, %v1706_v25  ;;  %v1186_v23 = vld [vmem:[#allocation10 + $0x280] sm:$0xff]  ;;  %v771_v5 = vrot.slane %v3966_v39, 1 }
 0x102   : > { %2400 = vmatmul.mubr.f32.gmra.mrb[4].mxu1 %v3955_v30  ;;  %2889 = vmatpush3.bf16.msra.mxu0 %v2888_v31 }
 0x103   : > { %2343 = vmatprep.mubr.msk.f32.mxu0 %vm3466_vm0, %v3467_v1  ;;  %2402 = vmatprep.mubr.msk.f32.mxu1 %vm3466_vm0, %v3467_v1  ;;  %v3995_v63 = vsel %vm1690_vm2, %v1691_v32, %v1692_v44  ;;  %v783_v44 = vrot.slane %v4027_v22, 1 }
 0x104   : > { %2913 = vmatpush3.bf16.msra.mxu1 %v2912_v33  ;;  %2890 = vmatprep.subr.bf16.mxu0 %v3465_v0  ;;  %v928_v33 = vld [vmem:[#allocation10 + $0x1f0] sm:$0xff] }
 0x105   : > { %2344 = vmatmul.mubr.f32.gmra.mrb[6].mxu0 %v3879_v38  ;;  %2914 = vmatprep.subr.bf16.mxu1 %v3465_v0  ;;  %v3988_v38 = vld [vmem:[%s3828_s18 + $0x20] sm:$0xff]  ;;  %v2927_v32 = vpack.c.bf16 %v929_v34, %v928_v33  ;;  %v1192_v34 = vld [vmem:[#allocation10 + $0x2b0] sm:$0xff] }
 0x106   : > { %2403 = vmatmul.mubr.f32.gmra.mrb[6].mxu1 %v3966_v39  ;;  %2346 = vmatprep.mubr.msk.f32.mxu0 %vm3466_vm0, %v3467_v1  ;;  %v1696_v11 = vrot.slane %v3988_v38, 2  ;;  %v1057_v33 = vld [vmem:[#allocation10 + $0x238] sm:$0xff] }
 0x107   : > { %2405 = vmatprep.mubr.msk.f32.mxu1 %vm3466_vm0, %v3467_v1  ;;  %2892 = vmatpush3.bf16.msra.mxu0 %v2891_v40  ;;  %v4054_v40 = vld [vmem:[%s3828_s18 + $0x50] sm:$0xff] }
 0x108   : > { %2916 = vmatpush3.bf16.msra.mxu1 %v2915_v45  ;;  %2893 = vmatprep.subr.bf16.mxu0 %v3465_v0  ;;  %v4035_v31 = vsel %vm1690_vm2, %v1694_v56, %v1696_v11  ;;  %v1377_v45 = vrot.slane %v4054_v40, 1  ;;  %v1187_v56 = vld [vmem:[#allocation10 + $0x288] sm:$0xff] }
 0x109   : > { %2347 = vmatmul.mubr.f32.gmra.mrb[8].mxu0 %v3884_v42  ;;  %2917 = vmatprep.subr.bf16.mxu1 %v3465_v0  ;;  %v4011_v42 = vld [vmem:[%s3828_s18 + $0x28] sm:$0xff]  ;;  %v2954_v3 = vpack.c.bf16 %v1187_v56, %v1186_v23 }
 0x10a   : > { %2406 = vmatmul.mubr.f32.gmra.mrb[8].mxu1 %v3988_v38  ;;  %2349 = vmatprep.mubr.msk.f32.mxu0 %vm3466_vm0, %v3467_v1  ;;  %v1698_v24 = vrot.slane %v4011_v42, 2  ;;  %v1194_v23 = vld [vmem:[#allocation10 + $0x2c0] sm:$0xff]  ;;  %v1195_v56 = vld [vmem:[#allocation10 + $0x2c8] sm:$0xff] }
 0x10b   : > { %2408 = vmatprep.mubr.msk.f32.mxu1 %vm3466_vm0, %v3467_v1  ;;  %2895 = vmatpush3.bf16.msra.mxu0 %v2894_v57  ;;  %v769_v57 = vrot.slane %v3955_v30, 1  ;;  %v1189_v30 = vld [vmem:[#allocation10 + $0x298] sm:$0xff] }
 0x10c   : > { %2919 = vmatpush3.bf16.msra.mxu1 %v2918_v58  ;;  %2896 = vmatprep.subr.bf16.mxu0 %v3465_v0  ;;  %v4057_v41 = vsel %vm1690_vm2, %v1696_v11, %v1698_v24  ;;  %v4086_v13 = vsel %vm1690_vm2, %v1698_v24, %v1700_v53  ;;  %v768_v58 = vsel %vm765_vm1, %v766_v50, %v767_v51  ;;  %v773_v24 = vrot.slane %v3988_v38, 1  ;;  %v4141_v50 = vld [vmem:[%s3841_s17 + $0x18] sm:$0xff] }
 0x10d   : > { %2350 = vmatmul.mubr.f32.gmra.mrb[10].mxu0 %v3896_v52  ;;  %2920 = vmatprep.subr.bf16.mxu1 %v3465_v0  ;;  %v2900_v52 = vpack.c.bf16 %v752_v15, %v751_v14  ;;  %v2930_v53 = vpack.c.bf16 %v1051_v54, %v1050_v20  ;;  %v1054_v14 = vld [vmem:[#allocation10 + $0x220] sm:$0xff]  ;;  %v1055_v15 = vld [vmem:[#allocation10 + $0x228] sm:$0xff]  ;;  %v2957_v39 = vpack.c.bf16 %v1189_v30, %v1188_v4  ;;  %v1196_v4 = vld [vmem:[#allocation10 + $0x2d0] sm:$0xff] }
 0x10e   : > { %2409 = vmatmul.mubr.f32.gmra.mrb[10].mxu1 %v4011_v42  ;;  %2352 = vmatprep.mubr.msk.f32.mxu0 %vm3466_vm0, %v3467_v1  ;;  %v2960_v38 = vpack.c.bf16 %v1191_v18, %v1190_v16  ;;  %v1058_v20 = vld [vmem:[#allocation10 + $0x240] sm:$0xff]  ;;  %v1059_v54 = vld [vmem:[#allocation10 + $0x248] sm:$0xff]  ;;  %v1197_v30 = vld [vmem:[#allocation10 + $0x2d8] sm:$0xff] }
 0x10f   : > { %2411 = vmatprep.mubr.msk.f32.mxu1 %vm3466_vm0, %v3467_v1  ;;  %2898 = vmatpush3.bf16.msra.mxu0 %v2897_v8  ;;  %v4104_v8 = vsel %vm765_vm1, %v767_v51, %v769_v57  ;;  %v1063_v16 = vld [vmem:[#allocation10 + $0x268] sm:$0xff]  ;;  %v1198_v18 = vld [vmem:[#allocation10 + $0x2e0] sm:$0xff] }
 0x110   : > { %2922 = vmatpush3.bf16.msra.mxu1 %v2921_v12  ;;  %2899 = vmatprep.subr.bf16.mxu0 %v3465_v0  ;;  %v4111_v12 = vld [vmem:[%s3841_s17 + $0x8] sm:$0xff] }
 0x111   : > { %2353 = vmatmul.mubr.f32.gmra.mrb[12].mxu0 %v3905_v61  ;;  %2923 = vmatprep.subr.bf16.mxu1 %v3465_v0  ;;  %v2903_v61 = vpack.c.bf16 %v754_v28, %v753_v27  ;;  %v4126_v27 = vld [vmem:[%s3841_s17 + $0x10] sm:$0xff] }
 0x112   : > { %2412 = vmatmul.mubr.f32.gmra.mrb[12].mxu1 %v3972_v47  ;;  %2355 = vmatprep.mubr.msk.f32.mxu0 %vm3466_vm0, %v3467_v1  ;;  %v1056_v28 = vld [vmem:[#allocation10 + $0x230] sm:$0xff] }
 0x113   : > { %2414 = vmatprep.mubr.msk.f32.mxu1 %vm3466_vm0, %v3467_v1  ;;  %2901 = vmatpush3.bf16.msra.mxu0 %v2900_v52  ;;  %v4119_v52 = vsel %vm765_vm1, %v769_v57, %v771_v5  ;;  %v2939_v51 = vpack.c.bf16 %v1057_v33, %v1056_v28  ;;  %v777_v57 = vrot.slane %v3972_v47, 1  ;;  %v2966_v47 = vpack.c.bf16 %v1195_v56, %v1194_v23  ;;  %v4186_v28 = vld [vmem:[%s3841_s17 + $0x30] sm:$0xff] }
 0x114   : > { %2925 = vmatpush3.bf16.msra.mxu1 %v2924_v26  ;;  %2902 = vmatprep.subr.bf16.mxu0 %v3465_v0  ;;  %v2936_v26 = vpack.c.bf16 %v1055_v15, %v1054_v14  ;;  %v4171_v14 = vld [vmem:[%s3841_s17 + $0x28] sm:$0xff] }
 0x115   : > { %2356 = vmatmul.mubr.f32.gmra.mrb[14].mxu0 %v3914_v6  ;;  %2926 = vmatprep.subr.bf16.mxu1 %v3465_v0  ;;  %v4079_v6 = vsel %vm765_vm1, %v783_v44, %v1377_v45  ;;  %v4134_v45 = vsel %vm765_vm1, %v771_v5, %v773_v24  ;;  %v779_v5 = vrot.slane %v3975_v48, 1 }
 0x116   : > { %2415 = vmatmul.mubr.f32.gmra.mrb[14].mxu1 %v3975_v48  ;;  %2358 = vmatprep.mubr.msk.f32.mxu0 %vm3466_vm0, %v3467_v1  ;;  %v2969_v48 = vpack.c.bf16 %v1197_v30, %v1196_v4  ;;  %v1501_v4 = vld [vmem:[#allocation10 + $0x388] sm:$0xff]  ;;  %v1215_v30 = vrot.slane %v4126_v27, 1 }
 0x117   : > { %2417 = vmatprep.mubr.msk.f32.mxu1 %vm3466_vm0, %v3467_v1  ;;  %2904 = vmatpush3.bf16.msra.mxu0 %v2903_v61  ;;  %v1193_v61 = vld [vmem:[#allocation10 + $0x2b8] sm:$0xff] }
 0x118   : > { %2928 = vmatpush3.bf16.msra.mxu1 %v2927_v32  ;;  %2929 = vmatprep.subr.bf16.mxu0 %v3465_v0  ;;  %v775_v32 = vrot.slane %v4011_v42, 1  ;;  %v2963_v42 = vpack.c.bf16 %v1193_v61, %v1192_v34  ;;  %v1064_v34 = vld [vmem:[#allocation10 + $0x270] sm:$0xff]  ;;  %v1065_v61 = vld [vmem:[#allocation10 + $0x278] sm:$0xff] }
 0x119   : > { %2359 = vmatmul.mubr.f32.gmra.mrb[16].mxu0 %v3927_v17  ;;  %2953 = vmatprep.subr.bf16.mxu1 %v3465_v0  ;;  %v1052_v17 = vld [vmem:[#allocation10 + $0x210] sm:$0xff] }
 0x11a   : > { %2418 = vmatmul.mubr.f32.gmra.mrb[16].mxu1 %v3992_v62  ;;  %2452 = vmatprep.mubr.msk.f32.mxu0 %vm3466_vm0, %v3467_v1  ;;  %v2933_v11 = vpack.c.bf16 %v1053_v60, %v1052_v17  ;;  %v2942_v17 = vpack.c.bf16 %v1059_v54, %v1058_v20  ;;  %v1060_v60 = vld [vmem:[#allocation10 + $0x250] sm:$0xff]  ;;  %v2951_v54 = vpack.c.bf16 %v1065_v61, %v1064_v34  ;;  %v1365_v34 = vld [vmem:[#allocation10 + $0x328] sm:$0xff] }
 0x11b   : > { %2511 = vmatprep.mubr.msk.f32.mxu1 %vm3466_vm0, %v3467_v1  ;;  %v4200_v20 = vld [vmem:[%s3841_s17 + $0x38] sm:$0xff] }
 0x11d   : > { %2453 = vmatmul.mubr.f32.vlgmr.msra.gmra.mrb[18].mxu0 %v768_v58  ;;  %v4151_v58 = vsel %vm765_vm1, %v773_v24, %v775_v32  ;;  %v1199_v24 = vld [vmem:[#allocation10 + $0x2e8] sm:$0xff] }
 0x11e   : > { %2512 = vmatmul.mubr.f32.vlgmr.msra.gmra.mrb[18].mxu1 %v4099_v59  ;;  %2931 = vmatpush3.bf16.msra.mxu0 %v2930_v53  ;;  %v4156_v53 = vld [vmem:[%s3841_s17 + $0x20] sm:$0xff] }
 0x11f   : > { %2455 = vmatprep.mubr.msk.f32.mxu0 %vm3466_vm0, %v3467_v1  ;;  %2514 = vmatprep.mubr.msk.f32.mxu1 %vm3466_vm0, %v3467_v1 }
 0x120   : > { %2932 = vmatprep.subr.bf16.mxu0 %v3465_v0  ;;  %2955 = vmatpush3.bf16.msra.mxu1 %v2954_v3  ;;  %v1061_v3 = vld [vmem:[#allocation10 + $0x258] sm:$0xff] }
 0x121   : > { %2456 = vmatmul.mubr.f32.gmra.mrb[20].mxu0 %v4104_v8  ;;  %2956 = vmatprep.subr.bf16.mxu1 %v3465_v0  ;;  %v2945_v15 = vpack.c.bf16 %v1061_v3, %v1060_v60  ;;  %v1360_v60 = vld [vmem:[#allocation10 + $0x300] sm:$0xff]  ;;  %v1361_v3 = vld [vmem:[#allocation10 + $0x308] sm:$0xff] }
 0x122   : > { %2515 = vmatmul.mubr.f32.gmra.mrb[20].mxu1 %v4111_v12  ;;  %2934 = vmatpush3.bf16.msra.mxu0 %v2933_v11  ;;  %v4166_v11 = vsel %vm765_vm1, %v775_v32, %v777_v57  ;;  %v1200_v32 = vld [vmem:[#allocation10 + $0x2f0] sm:$0xff] }
 0x123   : > { %2458 = vmatprep.mubr.msk.f32.mxu0 %vm3466_vm0, %v3467_v1  ;;  %2517 = vmatprep.mubr.msk.f32.mxu1 %vm3466_vm0, %v3467_v1 }
 0x124   : > { %2935 = vmatprep.subr.bf16.mxu0 %v3465_v0  ;;  %2958 = vmatpush3.bf16.msra.mxu1 %v2957_v39  ;;  %v1062_v39 = vld [vmem:[#allocation10 + $0x260] sm:$0xff] }
 0x125   : > { %2459 = vmatmul.mubr.f32.gmra.mrb[22].mxu0 %v4119_v52  ;;  %2959 = vmatprep.subr.bf16.mxu1 %v3465_v0  ;;  %v2948_v33 = vpack.c.bf16 %v1063_v16, %v1062_v39  ;;  %v1502_v16 = vld [vmem:[#allocation10 + $0x390] sm:$0xff] }
 0x126   : > { %2518 = vmatmul.mubr.f32.gmra.mrb[22].mxu1 %v4126_v27  ;;  %2937 = vmatpush3.bf16.msra.mxu0 %v2936_v26  ;;  %v781_v26 = vrot.slane %v3992_v62, 1  ;;  %v2972_v62 = vpack.c.bf16 %v1199_v24, %v1198_v18  ;;  %v1503_v18 = vld [vmem:[#allocation10 + $0x398] sm:$0xff] }
 0x127   : > { %2461 = vmatprep.mubr.msk.f32.mxu0 %vm3466_vm0, %v3467_v1  ;;  %2520 = vmatprep.mubr.msk.f32.mxu1 %vm3466_vm0, %v3467_v1  ;;  %v477_v24 = vld [vmem:[%s3843_s25 + $0x8] sm:$0xff]  ;;  %v3005_v61 = vpack.c.bf16 %v1503_v18, %v1502_v16  ;;  %v480_v16 = vld [vmem:[%s3843_s25 + $0x20] sm:$0xff]  ;;  %v1223_v18 = vrot.slane %v4186_v28, 1 }
 0x128   : > { %2961 = vmatpush3.bf16.msra.mxu1 %v2960_v38  ;;  %2938 = vmatprep.subr.bf16.mxu0 %v3465_v0  ;;  %v4181_v38 = vsel %vm765_vm1, %v777_v57, %v779_v5  ;;  %v4211_v56 = vsel %vm765_vm1, %v781_v26, %v783_v44  ;;  %v1212_v57 = vrot.slane %v4099_v59, 1  ;;  %v1500_v44 = vld [vmem:[#allocation10 + $0x380] sm:$0xff]  ;;  %v476_v59 = vld [vmem:[%s3843_s25] sm:$0xff] }
 0x129   : > { %2462 = vmatmul.mubr.f32.gmra.mrb[24].mxu0 %v4134_v45  ;;  %2962 = vmatprep.subr.bf16.mxu1 %v3465_v0  ;;  %v3002_v39 = vpack.c.bf16 %v1501_v4, %v1500_v44  ;;  %v1506_v44 = vld [vmem:[#allocation10 + $0x3b0] sm:$0xff]  ;;  %v1507_v4 = vld [vmem:[#allocation10 + $0x3b8] sm:$0xff] }
 0x12a   : > { %2521 = vmatmul.mubr.f32.gmra.mrb[24].mxu1 %v4141_v50  ;;  %2464 = vmatprep.mubr.msk.f32.mxu0 %vm3466_vm0, %v3467_v1 }
 0x12b   : > { %2523 = vmatprep.mubr.msk.f32.mxu1 %vm3466_vm0, %v3467_v1  ;;  %2940 = vmatpush3.bf16.msra.mxu0 %v2939_v51  ;;  %v1201_v51 = vld [vmem:[#allocation10 + $0x2f8] sm:$0xff] }
 0x12c   : > { %2964 = vmatpush3.bf16.msra.mxu1 %v2963_v42  ;;  %2941 = vmatprep.subr.bf16.mxu0 %v3465_v0  ;;  %v4195_v42 = vsel %vm765_vm1, %v779_v5, %v781_v26  ;;  %v2975_v23 = vpack.c.bf16 %v1201_v51, %v1200_v32  ;;  %v1504_v32 = vld [vmem:[#allocation10 + $0x3a0] sm:$0xff]  ;;  %v1505_v51 = vld [vmem:[#allocation10 + $0x3a8] sm:$0xff] }
 0x12d   : > { %2465 = vmatmul.mubr.f32.gmra.mrb[26].mxu0 %v4151_v58  ;;  %2965 = vmatprep.subr.bf16.mxu1 %v3465_v0 }
 0x12e   : > { %2524 = vmatmul.mubr.f32.gmra.mrb[26].mxu1 %v4156_v53  ;;  %2467 = vmatprep.mubr.msk.f32.mxu0 %vm3466_vm0, %v3467_v1 }
 0x12f   : > { %2526 = vmatprep.mubr.msk.f32.mxu1 %vm3466_vm0, %v3467_v1  ;;  %2943 = vmatpush3.bf16.msra.mxu0 %v2942_v17  ;;  %v1213_v17 = vrot.slane %v4111_v12, 1  ;;  %v2978_v12 = vpack.c.bf16 %v1361_v3, %v1360_v60  ;;  %v1366_v60 = vld [vmem:[#allocation10 + $0x330] sm:$0xff]  ;;  %v1367_v3 = vld [vmem:[#allocation10 + $0x338] sm:$0xff] }
 0x130   : > { %2967 = vmatpush3.bf16.msra.mxu1 %v2966_v47  ;;  %2944 = vmatprep.subr.bf16.mxu0 %v3465_v0  ;;  %v4218_v47 = vld [vmem:[%s3841_s17 + $0x40] sm:$0xff] }
 0x131   : > { %2468 = vmatmul.mubr.f32.gmra.mrb[28].mxu0 %v4166_v11  ;;  %2968 = vmatprep.subr.bf16.mxu1 %v3465_v0  ;;  %v1214_v5 = vsel %vm765_vm1, %v1212_v57, %v1213_v17  ;;  %v1216_v27 = vsel %vm765_vm1, %v1213_v17, %v1215_v30  ;;  %v3008_v17 = vpack.c.bf16 %v1505_v51, %v1504_v32  ;;  %v1225_v32 = vrot.slane %v4200_v20, 1 }
 0x132   : > { %2527 = vmatmul.mubr.f32.gmra.mrb[28].mxu1 %v4171_v14  ;;  %2470 = vmatprep.mubr.msk.f32.mxu0 %vm3466_vm0, %v3467_v1 }
 0x133   : > { %2529 = vmatprep.mubr.msk.f32.mxu1 %vm3466_vm0, %v3467_v1  ;;  %2946 = vmatpush3.bf16.msra.mxu0 %v2945_v15  ;;  %v1362_v15 = vld [vmem:[#allocation10 + $0x310] sm:$0xff] }
 0x134   : > { %2970 = vmatpush3.bf16.msra.mxu1 %v2969_v48  ;;  %2947 = vmatprep.subr.bf16.mxu0 %v3465_v0  ;;  %v1363_v48 = vld [vmem:[#allocation10 + $0x318] sm:$0xff] }
 0x135   : > { %2471 = vmatmul.mubr.f32.gmra.mrb[30].mxu0 %v4181_v38  ;;  %2971 = vmatprep.subr.bf16.mxu1 %v3465_v0  ;;  %v2981_v26 = vpack.c.bf16 %v1363_v48, %v1362_v15  ;;  %v1368_v15 = vld [vmem:[#allocation10 + $0x340] sm:$0xff]  ;;  %v1369_v48 = vld [vmem:[#allocation10 + $0x348] sm:$0xff] }
 0x136   : > { %2530 = vmatmul.mubr.f32.gmra.mrb[30].mxu1 %v4186_v28  ;;  %2473 = vmatprep.mubr.msk.f32.mxu0 %vm3466_vm0, %v3467_v1  ;;  %v481_v28 = vld [vmem:[%s3843_s25 + $0x28] sm:$0xff] }
 0x137   : > { %2532 = vmatprep.mubr.msk.f32.mxu1 %vm3466_vm0, %v3467_v1  ;;  %2949 = vmatpush3.bf16.msra.mxu0 %v2948_v33  ;;  %v1217_v33 = vrot.slane %v4141_v50, 1  ;;  %v478_v50 = vld [vmem:[%s3843_s25 + $0x10] sm:$0xff] }
 0x138   : > { %2973 = vmatpush3.bf16.msra.mxu1 %v2972_v62  ;;  %2950 = vmatprep.subr.bf16.mxu0 %v3465_v0  ;;  %v1364_v62 = vld [vmem:[#allocation10 + $0x320] sm:$0xff] }
 0x139   : > { %2474 = vmatmul.mubr.f32.gmra.mrb[32].mxu0 %v4195_v42  ;;  %2974 = vmatprep.subr.bf16.mxu1 %v3465_v0  ;;  %v1218_v57 = vsel %vm765_vm1, %v1215_v30, %v1217_v33  ;;  %v2987_v30 = vpack.c.bf16 %v1367_v3, %v1366_v60  ;;  %v482_v60 = vld [vmem:[%s3843_s25 + $0x30] sm:$0xff]  ;;  %v1227_v3 = vrot.slane %v4218_v47, 1 }
 0x13a   : > { %2533 = vmatmul.mubr.f32.gmra.mrb[32].mxu1 %v4200_v20  ;;  %2476 = vmatprep.mubr.msk.f32.mxu0 %vm3466_vm0, %v3467_v1  ;;  %v1513_v20 = vld [vmem:[#allocation10 + $0x3e8] sm:$0xff] }
 0x13b   : > { %2535 = vmatprep.mubr.msk.f32.mxu1 %vm3466_vm0, %v3467_v1  ;;  %2952 = vmatpush3.bf16.msra.mxu0 %v2951_v54  ;;  %v2984_v54 = vpack.c.bf16 %v1365_v34, %v1364_v62  ;;  %v1371_v62 = vld [vmem:[#allocation10 + $0x358] sm:$0xff]  ;;  %v1510_v34 = vld [vmem:[#allocation10 + $0x3d0] sm:$0xff] }
 0x13c   : > { %2976 = vmatpush3.bf16.msra.mxu1 %v2975_v23  ;;  %2977 = vmatprep.subr.bf16.mxu0 %v3465_v0  ;;  %v1219_v23 = vrot.slane %v4156_v53, 1  ;;  %v479_v53 = vld [vmem:[%s3843_s25 + $0x18] sm:$0xff] }
 0x13d   : > { %2477 = vmatmul.mubr.f32.gmra.mrb[34].mxu0 %v4211_v56  ;;  %3001 = vmatprep.subr.bf16.mxu1 %v3465_v0 }
 0x13e   : > { %2536 = vmatmul.mubr.f32.gmra.mrb[34].mxu1 %v4218_v47  ;;  %2570 = vmatprep.mubr.msk.f32.mxu0 %vm3466_vm0, %v3467_v1  ;;  %v1515_v47 = vld [vmem:[#allocation10 + $0x3f8] sm:$0xff] }
 0x13f   : > { %2629 = vmatprep.mubr.msk.f32.mxu1 %vm3466_vm0, %v3467_v1 }
 0x141   : > { %2571 = vmatmul.mubr.f32.vlgmr.msra.gmra.mrb[36].mxu0 %v476_v59  ;;  %v1221_v59 = vrot.slane %v4171_v14, 1  ;;  %v1508_v14 = vld [vmem:[#allocation10 + $0x3c0] sm:$0xff] }
 0x142   : > { %2630 = vmatmul.mubr.f32.vlgmr.msra.gmra.mrb[36].mxu1 %v1214_v5  ;;  %2979 = vmatpush3.bf16.msra.mxu0 %v2978_v12  ;;  %v1220_v12 = vsel %vm765_vm1, %v1217_v33, %v1219_v23  ;;  %v3011_v5 = vpack.c.bf16 %v1507_v4, %v1506_v44  ;;  %v1226_v44 = vsel %vm765_vm1, %v1223_v18, %v1225_v32 }
 0x143   : > { %2573 = vmatprep.mubr.msk.f32.mxu0 %vm3466_vm0, %v3467_v1  ;;  %2632 = vmatprep.mubr.msk.f32.mxu1 %vm3466_vm0, %v3467_v1  ;;  %v1224_v51 = vsel %vm765_vm1, %v1221_v59, %v1223_v18  ;;  %v484_v18 = vld [vmem:[%s3843_s25 + $0x40] sm:$0xff] }
 0x144   : > { %2980 = vmatprep.subr.bf16.mxu0 %v3465_v0  ;;  %3003 = vmatpush3.bf16.msra.mxu1 %v3002_v39  ;;  %v1509_v39 = vld [vmem:[#allocation10 + $0x3c8] sm:$0xff] }
 0x145   : > { %2574 = vmatmul.mubr.f32.gmra.mrb[38].mxu0 %v477_v24  ;;  %3004 = vmatprep.subr.bf16.mxu1 %v3465_v0  ;;  %v1222_v24 = vsel %vm765_vm1, %v1219_v23, %v1221_v59  ;;  %v3014_v33 = vpack.c.bf16 %v1509_v39, %v1508_v14  ;;  %v1372_v23 = vld [vmem:[#allocation10 + $0x360] sm:$0xff] }
 0x146   : > { %2633 = vmatmul.mubr.f32.gmra.mrb[38].mxu1 %v1216_v27  ;;  %2982 = vmatpush3.bf16.msra.mxu0 %v2981_v26  ;;  %v2990_v26 = vpack.c.bf16 %v1369_v48, %v1368_v15  ;;  %v1370_v27 = vld [vmem:[#allocation10 + $0x350] sm:$0xff]  ;;  %v475_v59 = vld [vmem:[%s3841_s17 + $0x48] sm:$0xff]  ;;  %v1228_v48 = vsel %vm765_vm1, %v1225_v32, %v1227_v3 }
 0x147   : > { %2576 = vmatprep.mubr.msk.f32.mxu0 %vm3466_vm0, %v3467_v1  ;;  %2635 = vmatprep.mubr.msk.f32.mxu1 %vm3466_vm0, %v3467_v1  ;;  %v483_v15 = vld [vmem:[%s3843_s25 + $0x38] sm:$0xff]  ;;  %v1229_v14 = vrot.slane %v475_v59, 1 }
 0x148   : > { %2983 = vmatprep.subr.bf16.mxu0 %v3465_v0  ;;  %3006 = vmatpush3.bf16.msra.mxu1 %v3005_v61  ;;  %v1511_v61 = vld [vmem:[#allocation10 + $0x3d8] sm:$0xff]  ;;  %v1679_v32 = vld [vmem:[#allocation10 + $0x428] sm:$0xff] }
 0x149   : > { %2577 = vmatmul.mubr.f32.gmra.mrb[40].mxu0 %v478_v50  ;;  %3007 = vmatprep.subr.bf16.mxu1 %v3465_v0  ;;  %v2993_v50 = vpack.c.bf16 %v1371_v62, %v1370_v27  ;;  %v1676_v62 = vld [vmem:[#allocation10 + $0x410] sm:$0xff] }
 0x14a   : > { %2636 = vmatmul.mubr.f32.gmra.mrb[40].mxu1 %v1218_v57  ;;  %2985 = vmatpush3.bf16.msra.mxu0 %v2984_v54  ;;  %v3017_v54 = vpack.c.bf16 %v1511_v61, %v1510_v34  ;;  %v1373_v57 = vld [vmem:[#allocation10 + $0x368] sm:$0xff]  ;;  %v1677_v34 = vld [vmem:[#allocation10 + $0x418] sm:$0xff] }
 0x14b   : > { %2579 = vmatprep.mubr.msk.f32.mxu0 %vm3466_vm0, %v3467_v1  ;;  %2638 = vmatprep.mubr.msk.f32.mxu1 %vm3466_vm0, %v3467_v1  ;;  %v2996_v4 = vpack.c.bf16 %v1373_v57, %v1372_v23  ;;  %v3029_v61 = vpack.c.bf16 %v1677_v34, %v1676_v62  ;;  %v1687_v23 = vld [vmem:[#allocation10 + $0x468] sm:$0xff]  ;;  %v1688_v57 = vld [vmem:[#allocation10 + $0x470] sm:$0xff] }
 0x14c   : > { %3009 = vmatpush3.bf16.msra.mxu1 %v3008_v17  ;;  %2986 = vmatprep.subr.bf16.mxu0 %v3465_v0  ;;  %v1512_v17 = vld [vmem:[#allocation10 + $0x3e0] sm:$0xff] }
 0x14d   : > { %2580 = vmatmul.mubr.f32.gmra.mrb[42].mxu0 %v479_v53  ;;  %3010 = vmatprep.subr.bf16.mxu1 %v3465_v0  ;;  %v3020_v53 = vpack.c.bf16 %v1513_v20, %v1512_v17  ;;  %v1689_v17 = vld [vmem:[#allocation10 + $0x478] sm:$0xff] }
 0x14e   : > { %2639 = vmatmul.mubr.f32.gmra.mrb[42].mxu1 %v1220_v12  ;;  %2582 = vmatprep.mubr.msk.f32.mxu0 %vm3466_vm0, %v3467_v1  ;;  %v1374_v12 = vld [vmem:[#allocation10 + $0x370] sm:$0xff] }
 0x14f   : > { %2641 = vmatprep.mubr.msk.f32.mxu1 %vm3466_vm0, %v3467_v1  ;;  %2988 = vmatpush3.bf16.msra.mxu0 %v2987_v30  ;;  %v1375_v30 = vld [vmem:[#allocation10 + $0x378] sm:$0xff] }
 0x150   : > { %3012 = vmatpush3.bf16.msra.mxu1 %v3011_v5  ;;  %2989 = vmatprep.subr.bf16.mxu0 %v3465_v0  ;;  %v1514_v5 = vld [vmem:[#allocation10 + $0x3f0] sm:$0xff]  ;;  %v2999_v39 = vpack.c.bf16 %v1375_v30, %v1374_v12 }
 0x151   : > { %2583 = vmatmul.mubr.f32.gmra.mrb[44].mxu0 %v480_v16  ;;  %3013 = vmatprep.subr.bf16.mxu1 %v3465_v0  ;;  %v3023_v16 = vpack.c.bf16 %v1515_v47, %v1514_v5 }
 0x152   : > { %2642 = vmatmul.mubr.f32.gmra.mrb[44].mxu1 %v1222_v24  ;;  %2585 = vmatprep.mubr.msk.f32.mxu0 %vm3466_vm0, %v3467_v1  ;;  %v1230_v24 = vsel %vm765_vm1, %v1227_v3, %v1229_v14 }
 0x153   : > { %2644 = vmatprep.mubr.msk.f32.mxu1 %vm3466_vm0, %v3467_v1  ;;  %2991 = vmatpush3.bf16.msra.mxu0 %v2990_v26  ;;  %v1674_v26 = vld [vmem:[#allocation10 + $0x400] sm:$0xff] }
 0x154   : > { %3015 = vmatpush3.bf16.msra.mxu1 %v3014_v33  ;;  %2992 = vmatprep.subr.bf16.mxu0 %v3465_v0  ;;  %v1675_v33 = vld [vmem:[#allocation10 + $0x408] sm:$0xff] }
 0x155   : > { %2586 = vmatmul.mubr.f32.gmra.mrb[46].mxu0 %v481_v28  ;;  %3016 = vmatprep.subr.bf16.mxu1 %v3465_v0  ;;  %v3026_v27 = vpack.c.bf16 %v1675_v33, %v1674_v26  ;;  %v1678_v28 = vld [vmem:[#allocation10 + $0x420] sm:$0xff] }
 0x156   : > { %2645 = vmatmul.mubr.f32.gmra.mrb[46].mxu1 %v1224_v51  ;;  %2588 = vmatprep.mubr.msk.f32.mxu0 %vm3466_vm0, %v3467_v1  ;;  %v1681_v51 = vld [vmem:[#allocation10 + $0x438] sm:$0xff] }
 0x157   : > { %2647 = vmatprep.mubr.msk.f32.mxu1 %vm3466_vm0, %v3467_v1  ;;  %2994 = vmatpush3.bf16.msra.mxu0 %v2993_v50  ;;  %v1683_v50 = vld [vmem:[#allocation10 + $0x448] sm:$0xff] }
 0x158   : > { %3018 = vmatpush3.bf16.msra.mxu1 %v3017_v54  ;;  %2995 = vmatprep.subr.bf16.mxu0 %v3465_v0  ;;  %v1685_v54 = vld [vmem:[#allocation10 + $0x458] sm:$0xff] }
 0x159   : > { %2589 = vmatmul.mubr.f32.gmra.mrb[48].mxu0 %v482_v60  ;;  %3019 = vmatprep.subr.bf16.mxu1 %v3465_v0 }
 0x15a   : > { %2648 = vmatmul.mubr.f32.gmra.mrb[48].mxu1 %v1226_v44  ;;  %2591 = vmatprep.mubr.msk.f32.mxu0 %vm3466_vm0, %v3467_v1 }
 0x15b   : > { %2650 = vmatprep.mubr.msk.f32.mxu1 %vm3466_vm0, %v3467_v1  ;;  %2997 = vmatpush3.bf16.msra.mxu0 %v2996_v4 }
 0x15c   : > { %3021 = vmatpush3.bf16.msra.mxu1 %v3020_v53  ;;  %2998 = vmatprep.subr.bf16.mxu0 %v3465_v0 }
 0x15d   : > { %2592 = vmatmul.mubr.f32.gmra.mrb[50].mxu0 %v483_v15  ;;  %3022 = vmatprep.subr.bf16.mxu1 %v3465_v0 }
 0x15e   : > { %2651 = vmatmul.mubr.f32.gmra.mrb[50].mxu1 %v1228_v48  ;;  %2594 = vmatprep.mubr.msk.f32.mxu0 %vm3466_vm0, %v3467_v1 }
 0x15f   : > { %2653 = vmatprep.mubr.msk.f32.mxu1 %vm3466_vm0, %v3467_v1  ;;  %3000 = vmatpush3.bf16.msra.mxu0 %v2999_v39 }
 0x160   : > { %3024 = vmatpush3.bf16.msra.mxu1 %v3023_v16  ;;  %3025 = vmatprep.subr.bf16.mxu0 %v3465_v0 }
 0x161   : > { %2595 = vmatmul.mubr.f32.gmra.mrb[52].mxu0 %v484_v18  ;;  %3049 = vmatprep.subr.bf16.mxu1 %v3465_v0 }
 0x162   : > { %2654 = vmatmul.mubr.f32.gmra.mrb[52].mxu1 %v1230_v24  ;;  %2688 = vmatprep.mubr.msk.f32.mxu0 %vm3466_vm0, %v3467_v1 }
 0x163   : > { %2747 = vmatprep.mubr.msk.f32.mxu1 %vm3466_vm0, %v3467_v1 }
 0x165   : > { %2689 = vmatmul.mubr.f32.vlgmr.msra.gmra.mrb[54].mxu0 %v4104_v8  ;;  %v1680_v8 = vld [vmem:[#allocation10 + $0x430] sm:$0xff] }
 0x166   : > { %2748 = vmatmul.mubr.f32.vlgmr.msra.gmra.mrb[54].mxu1 %v3887_v43  ;;  %3027 = vmatpush3.bf16.msra.mxu0 %v3026_v27  ;;  %v3032_v43 = vpack.c.bf16 %v1679_v32, %v1678_v28 }
 0x167   : > { %2691 = vmatprep.mubr.msk.f32.mxu0 %vm3466_vm0, %v3467_v1  ;;  %2750 = vmatprep.mubr.msk.f32.mxu1 %vm3466_vm0, %v3467_v1 }
 0x168   : > { %3057 = vmatpush3.bf16.msra.mxu1 %v3026_v27  ;;  %3028 = vmatprep.subr.bf16.mxu0 %v3465_v0 }
 0x169   : > { %2692 = vmatmul.mubr.f32.gmra.mrb[56].mxu0 %v4119_v52  ;;  %3050 = vmatprep.subr.bf16.mxu1 %v3465_v0  ;;  %v1682_v52 = vld [vmem:[#allocation10 + $0x440] sm:$0xff] }
 0x16a   : > { %2751 = vmatmul.mubr.f32.gmra.mrb[56].mxu1 %v3892_v49  ;;  %3030 = vmatpush3.bf16.msra.mxu0 %v3029_v61  ;;  %v3035_v49 = vpack.c.bf16 %v1681_v51, %v1680_v8 }
 0x16b   : > { %2694 = vmatprep.mubr.msk.f32.mxu0 %vm3466_vm0, %v3467_v1  ;;  %2753 = vmatprep.mubr.msk.f32.mxu1 %vm3466_vm0, %v3467_v1 }
 0x16c   : > { %3058 = vmatpush3.bf16.msra.mxu1 %v3029_v61  ;;  %3031 = vmatprep.subr.bf16.mxu0 %v3465_v0 }
 0x16d   : > { %2695 = vmatmul.mubr.f32.gmra.mrb[58].mxu0 %v4134_v45  ;;  %3051 = vmatprep.subr.bf16.mxu1 %v3465_v0  ;;  %v1684_v45 = vld [vmem:[#allocation10 + $0x450] sm:$0xff] }
 0x16e   : > { %2754 = vmatmul.mubr.f32.gmra.mrb[58].mxu1 %v3900_v55  ;;  %3033 = vmatpush3.bf16.msra.mxu0 %v3032_v43  ;;  %v3038_v55 = vpack.c.bf16 %v1683_v50, %v1682_v52 }
 0x16f   : > { %2697 = vmatprep.mubr.msk.f32.mxu0 %vm3466_vm0, %v3467_v1  ;;  %2756 = vmatprep.mubr.msk.f32.mxu1 %vm3466_vm0, %v3467_v1 }
 0x170   : > { %3059 = vmatpush3.bf16.msra.mxu1 %v3032_v43  ;;  %3034 = vmatprep.subr.bf16.mxu0 %v3465_v0 }
 0x171   : > { %2698 = vmatmul.mubr.f32.gmra.mrb[60].mxu0 %v4151_v58  ;;  %3052 = vmatprep.subr.bf16.mxu1 %v3465_v0  ;;  %v1686_v58 = vld [vmem:[#allocation10 + $0x460] sm:$0xff] }
 0x172   : > { %2757 = vmatmul.mubr.f32.gmra.mrb[60].mxu1 %v3909_v2  ;;  %2700 = vmatprep.mubr.msk.f32.mxu0 %vm3466_vm0, %v3467_v1  ;;  %v3041_v2 = vpack.c.bf16 %v1685_v54, %v1684_v45 }
 0x173   : > { %2759 = vmatprep.mubr.msk.f32.mxu1 %vm3466_vm0, %v3467_v1  ;;  %3036 = vmatpush3.bf16.msra.mxu0 %v3035_v49 }
 0x174   : > { %3060 = vmatpush3.bf16.msra.mxu1 %v3035_v49  ;;  %3037 = vmatprep.subr.bf16.mxu0 %v3465_v0 }
 0x175   : > { %2701 = vmatmul.mubr.f32.gmra.mrb[62].mxu0 %v4166_v11  ;;  %3053 = vmatprep.subr.bf16.mxu1 %v3465_v0  ;;  %v465_v11 = vld [vmem:[%s3835_s14 + $0x50] sm:$0xff] }
 0x176   : > { %2760 = vmatmul.mubr.f32.gmra.mrb[62].mxu1 %v3918_v10  ;;  %2703 = vmatprep.mubr.msk.f32.mxu0 %vm3466_vm0, %v3467_v1  ;;  %v3044_v10 = vpack.c.bf16 %v1687_v23, %v1686_v58 }
 0x177   : > { %2762 = vmatprep.mubr.msk.f32.mxu1 %vm3466_vm0, %v3467_v1  ;;  %3039 = vmatpush3.bf16.msra.mxu0 %v3038_v55 }
 0x178   : > { %3061 = vmatpush3.bf16.msra.mxu1 %v3038_v55  ;;  %3040 = vmatprep.subr.bf16.mxu0 %v3465_v0 }
 0x179   : > { %2704 = vmatmul.mubr.f32.gmra.mrb[64].mxu0 %v4181_v38  ;;  %3054 = vmatprep.subr.bf16.mxu1 %v3465_v0  ;;  %v3047_v38 = vpack.c.bf16 %v1689_v17, %v1688_v57 }
 0x17a   : > { %2763 = vmatmul.mubr.f32.gmra.mrb[64].mxu1 %v3931_v21  ;;  %2706 = vmatprep.mubr.msk.f32.mxu0 %vm3466_vm0, %v3467_v1  ;;  %v1543_v21 = vrot.slane %v465_v11, 1 }
 0x17b   : > { %2765 = vmatprep.mubr.msk.f32.mxu1 %vm3466_vm0, %v3467_v1  ;;  %3042 = vmatpush3.bf16.msra.mxu0 %v3041_v2 }
 0x17c   : > { %3062 = vmatpush3.bf16.msra.mxu1 %v3041_v2  ;;  %3043 = vmatprep.subr.bf16.mxu0 %v3465_v0 }
 0x17d   : > { %2707 = vmatmul.mubr.f32.gmra.mrb[66].mxu0 %v4195_v42  ;;  %3055 = vmatprep.subr.bf16.mxu1 %v3465_v0 }
 0x17e   : > { %2766 = vmatmul.mubr.f32.gmra.mrb[66].mxu1 %v3947_v29  ;;  %2709 = vmatprep.mubr.msk.f32.mxu0 %vm3466_vm0, %v3467_v1  ;;  %v1544_v29 = vsel %vm765_vm1, %v1541_v37, %v1543_v21 }
 0x17f   : > { %2768 = vmatprep.mubr.msk.f32.mxu1 %vm3466_vm0, %v3467_v1  ;;  %3045 = vmatpush3.bf16.msra.mxu0 %v3044_v10 }
 0x180   : > { %3063 = vmatpush3.bf16.msra.mxu1 %v3044_v10  ;;  %3046 = vmatprep.subr.bf16.mxu0 %v3465_v0 }
 0x181   : > { %2710 = vmatmul.mubr.f32.gmra.mrb[68].mxu0 %v4211_v56  ;;  %3056 = vmatprep.subr.bf16.mxu1 %v3465_v0  ;;  %v1708_v0 = vrot.slane %v4054_v40, 2 }
 0x182   : > { %2769 = vmatmul.mubr.f32.gmra.mrb[68].mxu1 %v4069_v46  ;;  %2712 = vmatprep.mubr.msk.f32.mxu0 %vm3466_vm0, %v3467_v1 }
 0x183   : > { %2771 = vmatprep.mubr.msk.f32.mxu1 %vm3466_vm0, %v3467_v1  ;;  %3048 = vmatpush3.bf16.msra.mxu0 %v3047_v38 }
 0x184   : > { %3064 = vmatpush3.bf16.msra.mxu1 %v3047_v38 }
 0x185   : > { %2713 = vmatmul.mubr.f32.gmra.mrb[70].mxu0 %v4079_v6 }
 0x186   : > { %2772 = vmatmul.mubr.f32.gmra.mrb[70].mxu1 %v1544_v29  ;;  %2806 = vmatprep.mubr.msk.f32.mxu0 %vm3466_vm0, %v3467_v1 }
 0x187   : > { %2821 = vmatprep.mubr.msk.f32.mxu1 %vm3466_vm0, %v3467_v1 }
 0x189   : > { %2807 = vmatmul.mubr.f32.vlgmr.msra.gmra.mrb[72].mxu0 %v3995_v63  ;;  %v1709_v63 = vsel %vm1690_vm2, %v1706_v25, %v1708_v0 }
 0x18a   : > { %2822 = vmatmul.mubr.f32.vlgmr.msra.gmra.mrb[72].mxu1 %v4003_v7  ;;  %2809 = vmatprep.mubr.msk.f32.mxu0 %vm3466_vm0, %v3467_v1 }
 0x18b   : > { %2824 = vmatprep.mubr.msk.f32.mxu1 %vm3466_vm0, %v3467_v1 }
 0x18d   : > { %2810 = vmatmul.mubr.f32.gmra.mrb[74].mxu0 %v4014_v9 }
 0x18e   : > { %2825 = vmatmul.mubr.f32.gmra.mrb[74].mxu1 %v4021_v19  ;;  %2812 = vmatprep.mubr.msk.f32.mxu0 %vm3466_vm0, %v3467_v1 }
 0x18f   : > { %2827 = vmatprep.mubr.msk.f32.mxu1 %vm3466_vm0, %v3467_v1 }
 0x191   : > { %2813 = vmatmul.mubr.f32.gmra.mrb[76].mxu0 %v4035_v31 }
 0x192   : > { %2828 = vmatmul.mubr.f32.gmra.mrb[76].mxu1 %v4042_v35  ;;  %2815 = vmatprep.mubr.msk.f32.mxu0 %vm3466_vm0, %v3467_v1 }
 0x193   : > { %2830 = vmatprep.mubr.msk.f32.mxu1 %vm3466_vm0, %v3467_v1 }
 0x195   : > { %2816 = vmatmul.mubr.f32.gmra.mrb[78].mxu0 %v4057_v41 }
 0x196   : > { %2831 = vmatmul.mubr.f32.gmra.mrb[78].mxu1 %v1709_v63  ;;  %2818 = vmatprep.mubr.msk.f32.mxu0 %vm3466_vm0, %v3467_v1 }
 0x199   : > { %2819 = vmatmul.mubr.f32.gmra.mrb[80].mxu0 %v4086_v13 }
 0x1cc   : > { %v584_v7 = vpop.f32.mrb[0].mxu0 }
 0x1cd   : > { %v2336_v9 = vpop.f32.mrb[1].mxu0  ;;  %v694_v19 = vpop.f32.mrb[0].mxu1 }
 0x1ce   : > { %v695_v31 = vadd.f32 %v694_v19, %v584_v7  ;;  %v2395_v35 = vpop.f32.mrb[1].mxu1 }
 0x1d0   : > { %v589_v36 = vpop.f32.mrb[2].mxu0 }
 0x1d1   : > { %v2339_v37 = vpop.f32.mrb[3].mxu0  ;;  %v699_v40 = vpop.f32.mrb[2].mxu1 }
 0x1d2   : > { %v700_v46 = vadd.f32 %v699_v40, %v589_v36  ;;  %v2398_v22 = vpop.f32.mrb[3].mxu1 }
 0x1d4   : > { %v594_v6 = vpop.f32.mrb[4].mxu0 }
 0x1d5   : > { %v2342_v25 = vpop.f32.mrb[5].mxu0  ;;  %v704_v42 = vpop.f32.mrb[4].mxu1 }
 0x1d6   : > { %v705_v41 = vadd.f32 %v704_v42, %v594_v6  ;;  %v2401_v56 = vpop.f32.mrb[5].mxu1 }
 0x1d8   : > { %v599_v20 = vpop.f32.mrb[6].mxu0 }
 0x1d9   : > { %v2345_v60 = vpop.f32.mrb[7].mxu0  ;;  %v709_v1 = vpop.f32.mrb[6].mxu1 }
 0x1da   : > { %v710_v3 = vadd.f32 %v709_v1, %v599_v20  ;;  %v2404_v13 = vpop.f32.mrb[7].mxu1 }
 0x1dc   : > { %v604_v44 = vpop.f32.mrb[8].mxu0 }
 0x1dd   : > { %v2348_v4 = vpop.f32.mrb[9].mxu0  ;;  %v714_v53 = vpop.f32.mrb[8].mxu1 }
 0x1de   : > { %v715_v59 = vadd.f32 %v714_v53, %v604_v44  ;;  %v2407_v12 = vpop.f32.mrb[9].mxu1 }
 0x1e0   : > { %v609_v30 = vpop.f32.mrb[10].mxu0 }
 0x1e1   : > { %v2351_v5 = vpop.f32.mrb[11].mxu0  ;;  %v719_v47 = vpop.f32.mrb[10].mxu1 }
 0x1e2   : > { %v720_v15 = vadd.f32 %v719_v47, %v609_v30  ;;  %v2410_v48 = vpop.f32.mrb[11].mxu1 }
 0x1e4   : > { %v614_v14 = vpop.f32.mrb[12].mxu0 }
 0x1e5   : > { %v2354_v39 = vpop.f32.mrb[13].mxu0  ;;  %v724_v16 = vpop.f32.mrb[12].mxu1 }
 0x1e6   : > { %v725_v18 = vadd.f32 %v724_v16, %v614_v14  ;;  %v2413_v24 = vpop.f32.mrb[13].mxu1 }
 0x1e8   : > { %v619_v26 = vpop.f32.mrb[14].mxu0 }
 0x1e9   : > { %v2357_v33 = vpop.f32.mrb[15].mxu0  ;;  %v729_v27 = vpop.f32.mrb[14].mxu1 }
 0x1ea   : > { %v730_v62 = vadd.f32 %v729_v27, %v619_v26  ;;  %v2416_v34 = vpop.f32.mrb[15].mxu1 }
 0x1ec   : > { %v624_v61 = vpop.f32.mrb[16].mxu0 }
 0x1ed   : > { %v2360_v28 = vpop.f32.mrb[17].mxu0  ;;  %v734_v32 = vpop.f32.mrb[16].mxu1 }
 0x1ee   : > { %v735_v43 = vadd.f32 %v734_v32, %v624_v61  ;;  %v2419_v8 = vpop.f32.mrb[17].mxu1 }
 0x1f0   : > { %v860_v51 = vpop.f32.mrb[18].mxu0 }
 0x1f1   : > { %v904_v49 = vadd.f32 %v860_v51, %v695_v31  ;;  %v2454_v52 = vpop.f32.mrb[19].mxu0  ;;  %v996_v50 = vpop.f32.mrb[18].mxu1 }
 0x1f2   : > { %v2513_v55 = vpop.f32.mrb[19].mxu1 }
 0x1f3   : > { %v1040_v45 = vadd.f32 %v996_v50, %v904_v49 }
 0x1f4   : > { %v865_v54 = vpop.f32.mrb[20].mxu0 }
 0x1f5   : > { %v905_v2 = vadd.f32 %v865_v54, %v700_v46  ;;  %v2457_v58 = vpop.f32.mrb[21].mxu0  ;;  %v1001_v23 = vpop.f32.mrb[20].mxu1 }
 0x1f6   : > { %v2516_v10 = vpop.f32.mrb[21].mxu1 }
 0x1f7   : > { %v1041_v11 = vadd.f32 %v1001_v23, %v905_v2 }
 0x1f8   : > { %v870_v57 = vpop.f32.mrb[22].mxu0 }
 0x1f9   : > { %v906_v17 = vadd.f32 %v870_v57, %v705_v41  ;;  %v2460_v21 = vpop.f32.mrb[23].mxu0  ;;  %v1006_v38 = vpop.f32.mrb[22].mxu1 }
 0x1fa   : > { %v2519_v29 = vpop.f32.mrb[23].mxu1 }
 0x1fb   : > { %v1042_v0 = vadd.f32 %v1006_v38, %v906_v17 }
 0x1fc   : > { %v875_v63 = vpop.f32.mrb[24].mxu0 }
 0x1fd   : > { %v907_v7 = vadd.f32 %v875_v63, %v710_v3  ;;  %v2463_v9 = vpop.f32.mrb[25].mxu0  ;;  %v1011_v19 = vpop.f32.mrb[24].mxu1 }
 0x1fe   : > { %v2522_v31 = vpop.f32.mrb[25].mxu1 }
 0x1ff   : > { %v1043_v35 = vadd.f32 %v1011_v19, %v907_v7 }
 0x200   : > { %v880_v36 = vpop.f32.mrb[26].mxu0 }
 0x201   : > { %v908_v37 = vadd.f32 %v880_v36, %v715_v59  ;;  %v2466_v40 = vpop.f32.mrb[27].mxu0  ;;  %v1016_v46 = vpop.f32.mrb[26].mxu1 }
 0x202   : > { %v2525_v22 = vpop.f32.mrb[27].mxu1 }
 0x203   : > { %v1044_v6 = vadd.f32 %v1016_v46, %v908_v37 }
 0x204   : > { %v885_v25 = vpop.f32.mrb[28].mxu0 }
 0x205   : > { %v909_v42 = vadd.f32 %v885_v25, %v720_v15  ;;  %v2469_v56 = vpop.f32.mrb[29].mxu0  ;;  %v1021_v41 = vpop.f32.mrb[28].mxu1 }
 0x206   : > { %v2528_v20 = vpop.f32.mrb[29].mxu1 }
 0x207   : > { %v1045_v60 = vadd.f32 %v1021_v41, %v909_v42 }
 0x208   : > { %v890_v1 = vpop.f32.mrb[30].mxu0 }
 0x209   : > { %v910_v13 = vadd.f32 %v890_v1, %v725_v18  ;;  %v2472_v44 = vpop.f32.mrb[31].mxu0  ;;  %v1026_v3 = vpop.f32.mrb[30].mxu1 }
 0x20a   : > { %v2531_v4 = vpop.f32.mrb[31].mxu1 }
 0x20b   : > { %v1046_v53 = vadd.f32 %v1026_v3, %v910_v13 }
 0x20c   : > { %v895_v12 = vpop.f32.mrb[32].mxu0 }
 0x20d   : > { %v911_v30 = vadd.f32 %v895_v12, %v730_v62  ;;  %v2475_v5 = vpop.f32.mrb[33].mxu0  ;;  %v1031_v59 = vpop.f32.mrb[32].mxu1 }
 0x20e   : > { %v2534_v47 = vpop.f32.mrb[33].mxu1 }
 0x20f   : > { %v1047_v48 = vadd.f32 %v1031_v59, %v911_v30 }
 0x210   : > { %v900_v14 = vpop.f32.mrb[34].mxu0 }
 0x211   : > { %v912_v39 = vadd.f32 %v900_v14, %v735_v43  ;;  %v2478_v16 = vpop.f32.mrb[35].mxu0  ;;  %v1036_v15 = vpop.f32.mrb[34].mxu1 }
 0x212   : > { %v2537_v24 = vpop.f32.mrb[35].mxu1 }
 0x213   : > { %v1048_v26 = vadd.f32 %v1036_v15, %v912_v39 }
 0x214   : > { %v1132_v33 = vpop.f32.mrb[36].mxu0 }
 0x215   : > { %v1176_v27 = vadd.f32 %v1132_v33, %v1040_v45  ;;  %v2572_v34 = vpop.f32.mrb[37].mxu0  ;;  %v1306_v18 = vpop.f32.mrb[36].mxu1 }
 0x216   : > { %v2631_v61 = vpop.f32.mrb[37].mxu1 }
 0x217   : > { %v1350_v28 = vadd.f32 %v1306_v18, %v1176_v27 }
 0x218   : > { %v1137_v32 = vpop.f32.mrb[38].mxu0 }
 0x219   : > { %v1177_v8 = vadd.f32 %v1137_v32, %v1041_v11  ;;  %v2575_v51 = vpop.f32.mrb[39].mxu0  ;;  %v1311_v62 = vpop.f32.mrb[38].mxu1 }
 0x21a   : > { %v2634_v49 = vpop.f32.mrb[39].mxu1 }
 0x21b   : > { %v1351_v52 = vadd.f32 %v1311_v62, %v1177_v8 }
 0x21c   : > { %v1142_v50 = vpop.f32.mrb[40].mxu0 }
 0x21d   : > { %v1178_v55 = vadd.f32 %v1142_v50, %v1042_v0  ;;  %v2578_v54 = vpop.f32.mrb[41].mxu0  ;;  %v1316_v43 = vpop.f32.mrb[40].mxu1 }
 0x21e   : > { %v2637_v2 = vpop.f32.mrb[41].mxu1 }
 0x21f   : > { %v1352_v58 = vadd.f32 %v1316_v43, %v1178_v55 }
 0x220   : > { %v1147_v23 = vpop.f32.mrb[42].mxu0 }
 0x221   : > { %v1179_v10 = vadd.f32 %v1147_v23, %v1043_v35  ;;  %v2581_v57 = vpop.f32.mrb[43].mxu0  ;;  %v1321_v45 = vpop.f32.mrb[42].mxu1 }
 0x222   : > { %v2640_v17 = vpop.f32.mrb[43].mxu1 }
 0x223   : > { %v1353_v21 = vadd.f32 %v1321_v45, %v1179_v10 }
 0x224   : > { %v1152_v38 = vpop.f32.mrb[44].mxu0 }
 0x225   : > { %v1180_v29 = vadd.f32 %v1152_v38, %v1044_v6  ;;  %v2584_v63 = vpop.f32.mrb[45].mxu0  ;;  %v1326_v11 = vpop.f32.mrb[44].mxu1 }
 0x226   : > { %v2643_v7 = vpop.f32.mrb[45].mxu1 }
 0x227   : > { %v1354_v9 = vadd.f32 %v1326_v11, %v1180_v29 }
 0x228   : > { %v1157_v19 = vpop.f32.mrb[46].mxu0 }
 0x229   : > { %v1181_v31 = vadd.f32 %v1157_v19, %v1045_v60  ;;  %v2587_v36 = vpop.f32.mrb[47].mxu0  ;;  %v1331_v0 = vpop.f32.mrb[46].mxu1 }
 0x22a   : > { %v2646_v37 = vpop.f32.mrb[47].mxu1 }
 0x22b   : > { %v1355_v40 = vadd.f32 %v1331_v0, %v1181_v31 }
 0x22c   : > { %v1162_v46 = vpop.f32.mrb[48].mxu0 }
 0x22d   : > { %v1182_v22 = vadd.f32 %v1162_v46, %v1046_v53  ;;  %v2590_v25 = vpop.f32.mrb[49].mxu0  ;;  %v1336_v35 = vpop.f32.mrb[48].mxu1 }
 0x22e   : > { %v2649_v42 = vpop.f32.mrb[49].mxu1 }
 0x22f   : > { %v1356_v56 = vadd.f32 %v1336_v35, %v1182_v22 }
 0x230   : > { %v1167_v41 = vpop.f32.mrb[50].mxu0 }
 0x231   : > { %v1183_v20 = vadd.f32 %v1167_v41, %v1047_v48  ;;  %v2593_v1 = vpop.f32.mrb[51].mxu0  ;;  %v1341_v6 = vpop.f32.mrb[50].mxu1 }
 0x232   : > { %v2652_v13 = vpop.f32.mrb[51].mxu1 }
 0x233   : > { %v1357_v44 = vadd.f32 %v1341_v6, %v1183_v20 }
 0x234   : > { %v1172_v3 = vpop.f32.mrb[52].mxu0 }
 0x235   : > { %v1184_v4 = vadd.f32 %v1172_v3, %v1048_v26  ;;  %v2596_v12 = vpop.f32.mrb[53].mxu0  ;;  %v1346_v60 = vpop.f32.mrb[52].mxu1 }
 0x236   : > { %v2655_v30 = vpop.f32.mrb[53].mxu1 }
 0x237   : > { %v1358_v5 = vadd.f32 %v1346_v60, %v1184_v4 }
 0x238   : > { %v1446_v59 = vpop.f32.mrb[54].mxu0 }
 0x239   : > { %v1490_v47 = vadd.f32 %v1446_v59, %v1350_v28  ;;  %v2690_v14 = vpop.f32.mrb[55].mxu0  ;;  %v1620_v53 = vpop.f32.mrb[54].mxu1 }
 0x23a   : > { %v2749_v39 = vpop.f32.mrb[55].mxu1 }
 0x23b   : > { %v1664_v16 = vadd.f32 %v1620_v53, %v1490_v47 }
 0x23c   : > { %v1451_v15 = vpop.f32.mrb[56].mxu0 }
 0x23d   : > { %v1491_v24 = vadd.f32 %v1451_v15, %v1351_v52  ;;  %v2693_v33 = vpop.f32.mrb[57].mxu0  ;;  %v1625_v48 = vpop.f32.mrb[56].mxu1 }
 0x23e   : > { %v2752_v27 = vpop.f32.mrb[57].mxu1 }
 0x23f   : > { %v1665_v34 = vadd.f32 %v1625_v48, %v1491_v24 }
 0x240   : > { %v1456_v18 = vpop.f32.mrb[58].mxu0 }
 0x241   : > { %v1492_v61 = vadd.f32 %v1456_v18, %v1352_v58  ;;  %v2696_v32 = vpop.f32.mrb[59].mxu0  ;;  %v1630_v26 = vpop.f32.mrb[58].mxu1 }
 0x242   : > { %v2755_v8 = vpop.f32.mrb[59].mxu1 }
 0x243   : > { %v1666_v51 = vadd.f32 %v1630_v26, %v1492_v61 }
 0x244   : > { %v1461_v62 = vpop.f32.mrb[60].mxu0 }
 0x245   : > { %v1493_v49 = vadd.f32 %v1461_v62, %v1353_v21  ;;  %v2699_v50 = vpop.f32.mrb[61].mxu0  ;;  %v1635_v28 = vpop.f32.mrb[60].mxu1 }
 0x246   : > { %v2758_v55 = vpop.f32.mrb[61].mxu1 }
 0x247   : > { %v4403_v54 = vadd.f32 %v1635_v28, %v1493_v49 }
 0x248   : > { %v1466_v43 = vpop.f32.mrb[62].mxu0 }
 0x249   : > { %v1494_v2 = vadd.f32 %v1466_v43, %v1354_v9  ;;  %v2702_v52 = vpop.f32.mrb[63].mxu0  ;;  %v1640_v23 = vpop.f32.mrb[62].mxu1 }
 0x24a   : > { %v2761_v10 = vpop.f32.mrb[63].mxu1 }
 0x24b   : > { %v4405_v57 = vadd.f32 %v1640_v23, %v1494_v2 }
 0x24c   : > { %v1471_v45 = vpop.f32.mrb[64].mxu0 }
 0x24d   : > { %v1495_v58 = vadd.f32 %v1471_v45, %v1355_v40  ;;  %v2705_v17 = vpop.f32.mrb[65].mxu0  ;;  %v1645_v38 = vpop.f32.mrb[64].mxu1 }
 0x24e   : > { %v2764_v29 = vpop.f32.mrb[65].mxu1 }
 0x24f   : > { %v1669_v63 = vadd.f32 %v1645_v38, %v1495_v58 }
 0x250   : > { %v1476_v11 = vpop.f32.mrb[66].mxu0 }
 0x251   : > { %v1496_v21 = vadd.f32 %v1476_v11, %v1356_v56  ;;  %v2708_v7 = vpop.f32.mrb[67].mxu0  ;;  %v1650_v19 = vpop.f32.mrb[66].mxu1  ;;  %v2073_v56 = vld [vmem:[#allocation11] ss:$0 sm:$0xff] }
 0x252   : > { %v2767_v31 = vpop.f32.mrb[67].mxu1 }
 0x253   : > { %v1670_v36 = vadd.f32 %v1650_v19, %v1496_v21 }
 0x254   : > { %v1481_v0 = vpop.f32.mrb[68].mxu0 }
 0x255   : > { %v1497_v9 = vadd.f32 %v1481_v0, %v1357_v44  ;;  %v2711_v37 = vpop.f32.mrb[69].mxu0  ;;  %v1655_v46 = vpop.f32.mrb[68].mxu1 }
 0x256   : > { %v2770_v22 = vpop.f32.mrb[69].mxu1 }
 0x257   : > { %v1671_v25 = vadd.f32 %v1655_v46, %v1497_v9 }
 0x258   : > { %v1486_v35 = vpop.f32.mrb[70].mxu0 }
 0x259   : > { %v1498_v42 = vadd.f32 %v1486_v35, %v1358_v5  ;;  %v2714_v40 = vpop.f32.mrb[71].mxu0  ;;  %v1660_v41 = vpop.f32.mrb[70].mxu1 }
 0x25a   : > { %v2773_v20 = vpop.f32.mrb[71].mxu1 }
 0x25b   : > { %v1672_v1 = vadd.f32 %v1660_v41, %v1498_v42 }
 0x25c   : > { %v1785_v6 = vpop.f32.mrb[72].mxu0 }
 0x25d   : > { %v1829_v13 = vadd.f32 %v1785_v6, %v1664_v16  ;;  %v1810_v3 = vpop.f32.mrb[72].mxu1  ;;  %v2808_v4 = vpop.f32.mrb[73].mxu0 }
 0x25e   : > { %v1834_v12 = vadd.f32 %v1810_v3, %v1669_v63  ;;  %v2823_v60 = vpop.f32.mrb[73].mxu1 }
 0x25f   : > { %v1845_v30 = vadd.f32 %v2073_v56, %v1829_v13 }
 0x260   : > { %v1850_v44 = vadd.f32 %v2073_v56, %v1834_v12  ;;  %v1790_v59 = vpop.f32.mrb[74].mxu0 }
 0x261   : > { %1854 = vst [vmem:[%s4408_s7] sm:$0xff] %v1845_v30  ;;  %v1830_v5 = vadd.f32 %v1790_v59, %v1665_v34  ;;  %v1815_v47 = vpop.f32.mrb[74].mxu1  ;;  %v2811_v14 = vpop.f32.mrb[75].mxu0 }
 0x262   : > { %1859 = vst [vmem:[%s4408_s7 + $0x28] sm:$0xff] %v1850_v44  ;;  %v1835_v53 = vadd.f32 %v1815_v47, %v1670_v36  ;;  %v2826_v39 = vpop.f32.mrb[75].mxu1 }
 0x263   : > { %v1846_v16 = vadd.f32 %v2073_v56, %v1830_v5 }
 0x264   : > { %v1851_v15 = vadd.f32 %v2073_v56, %v1835_v53  ;;  %v1795_v24 = vpop.f32.mrb[76].mxu0 }
 0x265   : > { %1855 = vst [vmem:[%s4408_s7 + $0x8] sm:$0xff] %v1846_v16  ;;  %v1831_v33 = vadd.f32 %v1795_v24, %v1666_v51  ;;  %v1820_v48 = vpop.f32.mrb[76].mxu1  ;;  %v2814_v27 = vpop.f32.mrb[77].mxu0 }
 0x266   : > { %1860 = vst [vmem:[%s4408_s7 + $0x30] sm:$0xff] %v1851_v15  ;;  %v1836_v18 = vadd.f32 %v1820_v48, %v1671_v25  ;;  %v2829_v61 = vpop.f32.mrb[77].mxu1 }
 0x267   : > { %v1847_v34 = vadd.f32 %v2073_v56, %v1831_v33 }
 0x268   : > { %v1852_v32 = vadd.f32 %v2073_v56, %v1836_v18  ;;  %v1800_v26 = vpop.f32.mrb[78].mxu0 }
 0x269   : > { %1856 = vst [vmem:[%s4408_s7 + $0x10] sm:$0xff] %v1847_v34  ;;  %v1832_v8 = vadd.f32 %v1800_v26, %v4403_v54  ;;  %v1825_v62 = vpop.f32.mrb[78].mxu1  ;;  %v2817_v49 = vpop.f32.mrb[79].mxu0 }
 0x26a   : > { %1861 = vst [vmem:[%s4408_s7 + $0x38] sm:$0xff] %v1852_v32  ;;  %v1837_v51 = vadd.f32 %v1825_v62, %v1672_v1  ;;  %v2832_v50 = vpop.f32.mrb[79].mxu1 }
 0x26b   : > { %v1848_v28 = vadd.f32 %v2073_v56, %v1832_v8 }
 0x26c   : > { %v1853_v55 = vadd.f32 %v2073_v56, %v1837_v51  ;;  %v1805_v43 = vpop.f32.mrb[80].mxu0 }
 0x26d   : > { %1857 = vst [vmem:[%s4408_s7 + $0x18] sm:$0xff] %v1848_v28  ;;  %v1833_v2 = vadd.f32 %v1805_v43, %v4405_v57  ;;  %v2820_v52 = vpop.f32.mrb[81].mxu0 }
 0x26e   : > { %1862 = vst [vmem:[%s4408_s7 + $0x40] sm:$0xff] %v1853_v55 }
 0x26f   : > { %v1849_v54 = vadd.f32 %v2073_v56, %v1833_v2 }
 0x271   : > { %1858 = vst [vmem:[%s4408_s7 + $0x20] sm:$0xff] %v1849_v54 }
 0x272   : > { %3370 = shalt.err (!%p3367_p0)
}
 0x273   : > { %s3371_s13 = scalar_lea.hbm %s4425_s28, 1152  ;;  %s3375_s10 = scalar_lea.hbm %s4543_s19, 2304 }
 0x274   : > { %p3372_p9 = scmp.ne.s32.totalorder %s4425_s28, %s3371_s13  ;;  %p3376_p7 = scmp.lt.u32.totalorder %s4425_s28, %s4543_s19 }
 0x275   : > { %p3377_p2 = scmp.lt.u32.totalorder %s3375_s10, %s3371_s13  ;;  %p3379_p6 = scmp.lt.u32.totalorder %s3371_s13, %s4425_s28 }
 0x276   : > { %p3373_p1 = pnand %p3372_p9, %p4544_p11 }
 0x277   : > { %p3378_p13 = por %p3377_p2, %p3376_p7 }
 0x278   : > { %p3374_p10 = pneg %p3373_p1 }
 0x279   : > { %p3380_p8 = por %p3379_p6, %p3378_p13 }
 0x27b   : > { %p3381_p5 = pnand %p3380_p8, %p3374_p10 }
 0x27d   : > { %3384 = shalt.err (!%p3381_p5)
}
 0x27e   : > { %s3469_s15 = smov 128   ;;  %s3470_s25 = smov 8  }
 0x27f   : > { %3092 = dma.vmem_to_hbm [thread:$0]  (%p4544_p11), %s4427_s4, 1152, %s4425_s28, %s1864_s24, %s3469_s15, %s3469_s15, %s3470_s25  }
 0x280 PF: > { %s4545_s27 = sld [smem:[#allocation20_spill]]  ;;  %s4546_s7 = sld [smem:[#allocation22_spill]] }
 0x281   : > { %p4548_p12 = scmp.ge.s32.totalorder %s3455_s26, 2 }
 0x286   : > { %s1894_s1 = sand.u32 1, %s4545_s27   ;;  %p4547_p3 = scmp.ne.s32.totalorder %s4546_s7, 0 }
 0x287   : > { %s1895_s30 = scalar_lea.sflag [#allocation4], %s1894_s1 }
 0x288   : > { %p3115_p4 = pnand %p4548_p12, %p4547_p3 }
 0x28a   : > { %3430 = dma.done.wait (!%p3115_p4), %s1895_s30, 1152  }
 0x28b   : > { %3432 = vsyncadd (!%p3115_p4), %s1895_s30, 4294966144  ;;  %s29_s26 = sadd.s32 1, %s3455_s26   ;;  %s4549_s9 = sld [smem:[#allocation24_spill]] }
 0x28c   : > { %p26_p0 = scmp.ge.s32.totalorder %s29_s26, 4   ;;  %s4550_s24 = sld [smem:[#allocation21_spill]] }
 0x28d   : > { %s4551_s25 = sld [smem:[#allocation23_spill]]  ;;  %s4552_s21 = smov %s3439_s22 }
 0x28e   : > { %s4553_s22 = smov %s3443_s23  ;;  %28 = sbr.rel (!%p26_p0) target bundleno = 15 (0xf), region = 142 }
 0x291   : > { %s4554_s23 = smov %s4549_s9 }
 0x295   :  { %1900 = vsyncpa [#allocation3], 1 }
 0x296   :  { %1902 = vsyncpa [#allocation3 + $0x1], 1 }
 0x297   :  { %1903 = vsyncpa [#allocation6], 1 }
 0x298   :  { %1905 = vsyncpa [#allocation6 + $0x1], 1 }
 0x299   :  { %1906 = vsyncpa [#allocation9], 1 }
 0x29a   :  { %1908 = vsyncpa [#allocation9 + $0x1], 1 }
 0x29b   :  { %1909 = vsyncpa [#allocation12], 1 }
 0x29c   :  { %1910 = vsyncpa [#allocation4], 1 }
 0x29d   :  { %1912 = vsyncpa [#allocation4 + $0x1], 1 }

</bundles_post_ra>
